<compile_context>
chip_gen: v5e
topology: v5e:2x2
jax: 0.10.0
libtpu: 0.0.40
codegen_flags: <defaults>
</compile_context>

<pallas_src>
import jax
import jax.numpy as jnp
import numpy as np
from jax.experimental import pallas as pl
from jax.experimental.pallas import tpu as pltpu


# ----------------------- host-side constant construction ---------------------

def gaussian_kernel_1d(width: int, sigma: float) -> np.ndarray:
    half = (width - 1) / 2.0
    xs = np.arange(width, dtype=np.float64) - half
    k = np.exp(-(xs ** 2) / (2.0 * sigma ** 2))
    return (k / k.sum()).astype(np.float32)


def blur_matrix(size: int, k1d: np.ndarray) -> np.ndarray:
    # A[i, r] = k[r - i + pad] (zero outside support) so (A @ x)[i] is the
    # zero-padded 'same' 1-D correlation of x with k.
    K = k1d.shape[0]
    pad = K // 2
    idx = np.arange(size)
    offs = idx[None, :] - idx[:, None] + pad
    valid = (offs >= 0) & (offs < K)
    return np.where(valid, k1d[np.clip(offs, 0, K - 1)], 0.0).astype(np.float32)


def shift_matrix(H: int, W: int, dy: int, dx: int) -> np.ndarray:
    # M[s, p] = 1 iff output pixel p=(i,j) reads source s=(i+dy-1, j+dx-1);
    # out-of-range neighbors get no entry (== zero 'same' padding).
    M = np.zeros((H * W, H * W), np.float32)
    for i in range(H):
        si = i + dy - 1
        if not (0 <= si < H):
            continue
        for j in range(W):
            sj = j + dx - 1
            if 0 <= sj < W:
                M[si * W + sj, i * W + j] = 1.0
    return M


def build_params(C, H, W, w, b, width=23, sigma=20.0):
    k1d = gaussian_kernel_1d(width, sigma)
    A = blur_matrix(H, k1d)                      # blur along rows
    B = blur_matrix(W, k1d)                      # blur along cols
    K2 = np.kron(A, B)                           # blur_flat = K2 @ x_flat
    taps = [shift_matrix(H, W, dy, dx) for dy in range(3) for dx in range(3)]
    Cout = int(w.shape[0])
    # torch.cat order of conv input channels is [d, d_hfc, u, u_hfc]; the
    # kernel builds rows as [d, u, d_hfc, u_hfc] -> permute weight Cin instead.
    perm = np.concatenate([np.arange(0, C), np.arange(2 * C, 3 * C),
                           np.arange(C, 2 * C), np.arange(3 * C, 4 * C)])
    w_r = np.asarray(w)[:, perm]                 # (Cout, 4C, 3, 3)
    wstk = np.stack([w_r[:, :, dy, dx] for dy in range(3) for dx in range(3)], 0)
    return dict(
        k2t=jnp.asarray(K2.T, dtype=jnp.bfloat16),              # (HW, HW)
        tstk=jnp.asarray(np.stack(taps, 0), dtype=jnp.bfloat16),  # (9, HW, HW)
        wstk=jnp.asarray(wstk, dtype=jnp.bfloat16),              # (9, Cout, 4C)
        b2=jnp.asarray(b, dtype=jnp.float32).reshape(Cout, 1),   # (Cout, 1)
    )


# ------------------------------ Pallas kernel ---------------------------------

def _hfc_conv_kernel(x_ref, hm_ref, k2t_ref, wstk_ref, tstk_ref, b_ref, o_ref):
    # x_ref:    (1, 2C, HW) f32   -- [d; u] channels, pixels flattened (lane-dense)
    # hm_ref:   (1, 1, HW)  f32   -- HFC mask
    # k2t_ref:  (HW, HW)    bf16  -- transposed 2-D Gaussian blur operator
    # wstk_ref: (9, Cout, 4C) bf16-- conv weights per tap, Cin order [d,u,dh,uh]
    # tstk_ref: (9, HW, HW) bf16  -- 0/1 shift matrices (zero 'same' padding)
    # b_ref:    (Cout, 1)   f32
    # o_ref:    (1, Cout, HW) f32
    x = x_ref[0]                                        # (2C, HW) f32
    xb = x.astype(jnp.bfloat16)

    # HFC of d and u in ONE lane-dense MXU matmul (bf16 operands, f32 accum).
    blur = jnp.dot(xb, k2t_ref[...], preferred_element_type=jnp.float32)
    hfc = (x - blur) * hm_ref[0]                        # (2C, HW) * (1, HW)
    xcat = jnp.concatenate([xb, hfc.astype(jnp.bfloat16)], axis=0)  # (4C, HW)

    cout, hw = o_ref.shape[1], o_ref.shape[2]
    acc = jnp.zeros((cout, hw), jnp.float32)
    for t in range(wstk_ref.shape[0]):                  # 9 taps, static unroll
        # 0/1 selection (exact) then channel contraction; accumulate in f32.
        shifted = jnp.dot(xcat, tstk_ref[t], preferred_element_type=jnp.float32)
        acc = acc + jnp.dot(wstk_ref[t], shifted.astype(jnp.bfloat16),
                            preferred_element_type=jnp.float32)
    o_ref[0] = (acc + b_ref[...]).astype(o_ref.dtype)   # one lane-dense store


def hfc_conv_forward(d, u, m, params):
    N, C, H, W = d.shape
    HW = H * W
    Cout = params["wstk"].shape[1]
    x = jnp.concatenate([d, u], axis=1).reshape(N, 2 * C, HW)   # contiguous
    hm = m.reshape(N, 1, HW)
    out = pl.pallas_call(
        _hfc_conv_kernel,
        out_shape=jax.ShapeDtypeStruct((N, Cout, HW), d.dtype),
        grid=(N,),
        in_specs=[
            pl.BlockSpec((1, 2 * C, HW), lambda n: (n, 0, 0)),
            pl.BlockSpec((1, 1, HW), lambda n: (n, 0, 0)),
            pl.BlockSpec((HW, HW), lambda n: (0, 0)),
            pl.BlockSpec((9, Cout, 4 * C), lambda n: (0, 0, 0)),
            pl.BlockSpec((9, HW, HW), lambda n: (0, 0, 0)),
            pl.BlockSpec((Cout, 1), lambda n: (0, 0)),
        ],
        out_specs=pl.BlockSpec((1, Cout, HW), lambda n: (n, 0, 0)),
        compiler_params=pltpu.CompilerParams(
            dimension_semantics=("parallel",)),
    )(x, hm, params["k2t"], params["wstk"], params["tstk"], params["b2"])
    return out.reshape(N, Cout, H, W)


# --------------------------- pure-JAX reference (f32) -------------------------

def ref_forward(d, u, m, w, b, width=23, sigma=20.0):
    C = d.shape[1]
    k1d = jnp.asarray(gaussian_kernel_1d(width, sigma))
    g2d = jnp.outer(k1d, k1d)
    dw = jnp.tile(g2d[None, None], (C, 1, 1, 1))
    pad = width // 2

    def blur(x):
        return jax.lax.conv_general_dilated(
            x, dw, (1, 1), ((pad, pad), (pad, pad)),
            dimension_numbers=("NCHW", "OIHW", "NCHW"), feature_group_count=C)

    d_hfc = (d - blur(d)) * m
    u_hfc = (u - blur(u)) * m
    xcat = jnp.concatenate([d, d_hfc, u, u_hfc], axis=1)
    out = jax.lax.conv_general_dilated(
        xcat, w, (1, 1), ((1, 1), (1, 1)),
        dimension_numbers=("NCHW", "OIHW", "NCHW"))
    return out + b[None, :, None, None]


# ------------------------------------ main -------------------------------------

if __name__ == "__main__":
    N, C, H, W = 2, 4, 16, 16          # in_channels = 4
    Cout = 8                            # out_channels = 8
    Cin = 4 * C

    key = jax.random.PRNGKey(0)
    kd, ku, km, kw, kb = jax.random.split(key, 5)
    d = jax.random.normal(kd, (N, C, H, W), dtype=jnp.float32)
    u = jax.random.normal(ku, (N, C, H, W), dtype=jnp.float32)
    m = (jax.random.uniform(km, (N, 1, H, W)) > 0.5).astype(jnp.float32)

    fan_in = Cin * 9
    bound = float(1.0 / np.sqrt(fan_in))
    w = jax.random.uniform(kw, (Cout, Cin, 3, 3), minval=-bound, maxval=bound,
                           dtype=jnp.float32)
    b = jax.random.uniform(kb, (Cout,), minval=-bound, maxval=bound,
                           dtype=jnp.float32)

    params = build_params(C, H, W, w, b)

    fwd = jax.jit(hfc_conv_forward)
    out = jax.block_until_ready(fwd(d, u, m, params))

    ref = ref_forward(d, u, m, w, b)
    # bf16 MXU operands (f32 accumulation) -> relaxed tolerance vs f32 reference.
    np.testing.assert_allclose(np.asarray(out), np.asarray(ref),
                               rtol=2e-2, atol=2e-2)
    print("KERNEL_OK")
</pallas_src>

<mosaic_0001>
module attributes {stable_mosaic.version = 11 : i64} {
  func.func @_hfc_conv_kernel(%arg0: i32, %arg1: memref<1x8x256xf32, #tpu.memory_space<vmem>>, %arg2: memref<1x1x256xf32, #tpu.memory_space<vmem>>, %arg3: memref<256x256xbf16, #tpu.memory_space<vmem>>, %arg4: memref<9x8x16xbf16, #tpu.memory_space<vmem>>, %arg5: memref<9x256x256xbf16, #tpu.memory_space<vmem>>, %arg6: memref<8x1xf32, #tpu.memory_space<vmem>>, %arg7: memref<1x8x256xf32, #tpu.memory_space<vmem>>) attributes {dimension_semantics = [#tpu.dimension_semantics<parallel>], iteration_bounds = array<i64: 2>, scalar_prefetch = 0 : i64, scratch_operands = 0 : i64, tpu.core_type = #tpu.core_type<tc>, window_params = [{transform_indices = @transform_0, window_bounds = array<i64: 1, 8, 256>}, {transform_indices = @transform_1, window_bounds = array<i64: 1, 1, 256>}, {pipeline_mode = #tpu.pipeline_mode<synchronous>, transform_indices = @transform_2, window_bounds = array<i64: 256, 256>}, {pipeline_mode = #tpu.pipeline_mode<synchronous>, transform_indices = @transform_3, window_bounds = array<i64: 9, 8, 16>}, {pipeline_mode = #tpu.pipeline_mode<synchronous>, transform_indices = @transform_4, window_bounds = array<i64: 9, 256, 256>}, {pipeline_mode = #tpu.pipeline_mode<synchronous>, transform_indices = @transform_5, window_bounds = array<i64: 8, 1>}, {transform_indices = @transform_6, window_bounds = array<i64: 1, 8, 256>}]} {
    %c0 = arith.constant 0 : index
    %c0_0 = arith.constant 0 : index
    %c0_1 = arith.constant 0 : index
    %0 = vector.load %arg1[%c0, %c0_0, %c0_1] : memref<1x8x256xf32, #tpu.memory_space<vmem>>, vector<1x8x256xf32>
    %1 = vector.shape_cast %0 : vector<1x8x256xf32> to vector<8x256xf32>
    %2 = arith.truncf %1 : vector<8x256xf32> to vector<8x256xbf16>
    %c0_2 = arith.constant 0 : index
    %c0_3 = arith.constant 0 : index
    %3 = vector.load %arg3[%c0_2, %c0_3] : memref<256x256xbf16, #tpu.memory_space<vmem>>, vector<256x256xbf16>
    %cst = arith.constant dense<0.000000e+00> : vector<8x256xf32>
    %4 = tpu.matmul %2, %3, %cst {dimension_numbers = #tpu.dot_dimension_numbers<[1], [0], [0], [1], [0, 0, 1, 1], [], []>} : vector<8x256xbf16>, vector<256x256xbf16>, vector<8x256xf32> -> vector<8x256xf32>
    %5 = arith.subf %1, %4 : vector<8x256xf32>
    %c0_4 = arith.constant 0 : index
    %c0_5 = arith.constant 0 : index
    %c0_6 = arith.constant 0 : index
    %6 = vector.load %arg2[%c0_4, %c0_5, %c0_6] : memref<1x1x256xf32, #tpu.memory_space<vmem>>, vector<1x1x256xf32>
    %7 = vector.shape_cast %6 : vector<1x1x256xf32> to vector<1x256xf32>
    %8 = vector.broadcast %7 : vector<1x256xf32> to vector<8x256xf32>
    %9 = arith.mulf %5, %8 : vector<8x256xf32>
    %10 = arith.truncf %9 : vector<8x256xf32> to vector<8x256xbf16>
    %11 = tpu.concatenate %2, %10 in 0 : vector<8x256xbf16>, vector<8x256xbf16> -> vector<16x256xbf16>
    %cst_7 = arith.constant 0.000000e+00 : f32
    %12 = vector.broadcast %cst_7 : f32 to vector<8x256xf32>
    %c0_8 = arith.constant 0 : index
    %c0_9 = arith.constant 0 : index
    %c0_10 = arith.constant 0 : index
    %13 = vector.load %arg5[%c0_8, %c0_9, %c0_10] : memref<9x256x256xbf16, #tpu.memory_space<vmem>>, vector<1x256x256xbf16>
    %14 = vector.shape_cast %13 : vector<1x256x256xbf16> to vector<256x256xbf16>
    %cst_11 = arith.constant dense<0.000000e+00> : vector<16x256xf32>
    %15 = tpu.matmul %11, %14, %cst_11 {dimension_numbers = #tpu.dot_dimension_numbers<[1], [0], [0], [1], [0, 0, 1, 1], [], []>} : vector<16x256xbf16>, vector<256x256xbf16>, vector<16x256xf32> -> vector<16x256xf32>
    %c0_12 = arith.constant 0 : index
    %c0_13 = arith.constant 0 : index
    %c0_14 = arith.constant 0 : index
    %16 = vector.load %arg4[%c0_12, %c0_13, %c0_14] : memref<9x8x16xbf16, #tpu.memory_space<vmem>>, vector<1x8x16xbf16>
    %17 = vector.shape_cast %16 : vector<1x8x16xbf16> to vector<8x16xbf16>
    %18 = arith.truncf %15 : vector<16x256xf32> to vector<16x256xbf16>
    %cst_15 = arith.constant dense<0.000000e+00> : vector<8x256xf32>
    %19 = tpu.matmul %17, %18, %cst_15 {dimension_numbers = #tpu.dot_dimension_numbers<[1], [0], [0], [1], [0, 0, 1, 1], [], []>} : vector<8x16xbf16>, vector<16x256xbf16>, vector<8x256xf32> -> vector<8x256xf32>
    %20 = arith.addf %12, %19 : vector<8x256xf32>
    %c1 = arith.constant 1 : index
    %c0_16 = arith.constant 0 : index
    %c0_17 = arith.constant 0 : index
    %21 = vector.load %arg5[%c1, %c0_16, %c0_17] : memref<9x256x256xbf16, #tpu.memory_space<vmem>>, vector<1x256x256xbf16>
    %22 = vector.shape_cast %21 : vector<1x256x256xbf16> to vector<256x256xbf16>
    %cst_18 = arith.constant dense<0.000000e+00> : vector<16x256xf32>
    %23 = tpu.matmul %11, %22, %cst_18 {dimension_numbers = #tpu.dot_dimension_numbers<[1], [0], [0], [1], [0, 0, 1, 1], [], []>} : vector<16x256xbf16>, vector<256x256xbf16>, vector<16x256xf32> -> vector<16x256xf32>
    %c1_19 = arith.constant 1 : index
    %c0_20 = arith.constant 0 : index
    %c0_21 = arith.constant 0 : index
    %24 = vector.load %arg4[%c1_19, %c0_20, %c0_21] : memref<9x8x16xbf16, #tpu.memory_space<vmem>>, vector<1x8x16xbf16>
    %25 = vector.shape_cast %24 : vector<1x8x16xbf16> to vector<8x16xbf16>
    %26 = arith.truncf %23 : vector<16x256xf32> to vector<16x256xbf16>
    %cst_22 = arith.constant dense<0.000000e+00> : vector<8x256xf32>
    %27 = tpu.matmul %25, %26, %cst_22 {dimension_numbers = #tpu.dot_dimension_numbers<[1], [0], [0], [1], [0, 0, 1, 1], [], []>} : vector<8x16xbf16>, vector<16x256xbf16>, vector<8x256xf32> -> vector<8x256xf32>
    %28 = arith.addf %20, %27 : vector<8x256xf32>
    %c2 = arith.constant 2 : index
    %c0_23 = arith.constant 0 : index
    %c0_24 = arith.constant 0 : index
    %29 = vector.load %arg5[%c2, %c0_23, %c0_24] : memref<9x256x256xbf16, #tpu.memory_space<vmem>>, vector<1x256x256xbf16>
    %30 = vector.shape_cast %29 : vector<1x256x256xbf16> to vector<256x256xbf16>
    %cst_25 = arith.constant dense<0.000000e+00> : vector<16x256xf32>
    %31 = tpu.matmul %11, %30, %cst_25 {dimension_numbers = #tpu.dot_dimension_numbers<[1], [0], [0], [1], [0, 0, 1, 1], [], []>} : vector<16x256xbf16>, vector<256x256xbf16>, vector<16x256xf32> -> vector<16x256xf32>
    %c2_26 = arith.constant 2 : index
    %c0_27 = arith.constant 0 : index
    %c0_28 = arith.constant 0 : index
    %32 = vector.load %arg4[%c2_26, %c0_27, %c0_28] : memref<9x8x16xbf16, #tpu.memory_space<vmem>>, vector<1x8x16xbf16>
    %33 = vector.shape_cast %32 : vector<1x8x16xbf16> to vector<8x16xbf16>
    %34 = arith.truncf %31 : vector<16x256xf32> to vector<16x256xbf16>
    %cst_29 = arith.constant dense<0.000000e+00> : vector<8x256xf32>
    %35 = tpu.matmul %33, %34, %cst_29 {dimension_numbers = #tpu.dot_dimension_numbers<[1], [0], [0], [1], [0, 0, 1, 1], [], []>} : vector<8x16xbf16>, vector<16x256xbf16>, vector<8x256xf32> -> vector<8x256xf32>
    %36 = arith.addf %28, %35 : vector<8x256xf32>
    %c3 = arith.constant 3 : index
    %c0_30 = arith.constant 0 : index
    %c0_31 = arith.constant 0 : index
    %37 = vector.load %arg5[%c3, %c0_30, %c0_31] : memref<9x256x256xbf16, #tpu.memory_space<vmem>>, vector<1x256x256xbf16>
    %38 = vector.shape_cast %37 : vector<1x256x256xbf16> to vector<256x256xbf16>
    %cst_32 = arith.constant dense<0.000000e+00> : vector<16x256xf32>
    %39 = tpu.matmul %11, %38, %cst_32 {dimension_numbers = #tpu.dot_dimension_numbers<[1], [0], [0], [1], [0, 0, 1, 1], [], []>} : vector<16x256xbf16>, vector<256x256xbf16>, vector<16x256xf32> -> vector<16x256xf32>
    %c3_33 = arith.constant 3 : index
    %c0_34 = arith.constant 0 : index
    %c0_35 = arith.constant 0 : index
    %40 = vector.load %arg4[%c3_33, %c0_34, %c0_35] : memref<9x8x16xbf16, #tpu.memory_space<vmem>>, vector<1x8x16xbf16>
    %41 = vector.shape_cast %40 : vector<1x8x16xbf16> to vector<8x16xbf16>
    %42 = arith.truncf %39 : vector<16x256xf32> to vector<16x256xbf16>
    %cst_36 = arith.constant dense<0.000000e+00> : vector<8x256xf32>
    %43 = tpu.matmul %41, %42, %cst_36 {dimension_numbers = #tpu.dot_dimension_numbers<[1], [0], [0], [1], [0, 0, 1, 1], [], []>} : vector<8x16xbf16>, vector<16x256xbf16>, vector<8x256xf32> -> vector<8x256xf32>
    %44 = arith.addf %36, %43 : vector<8x256xf32>
    %c4 = arith.constant 4 : index
    %c0_37 = arith.constant 0 : index
    %c0_38 = arith.constant 0 : index
    %45 = vector.load %arg5[%c4, %c0_37, %c0_38] : memref<9x256x256xbf16, #tpu.memory_space<vmem>>, vector<1x256x256xbf16>
    %46 = vector.shape_cast %45 : vector<1x256x256xbf16> to vector<256x256xbf16>
    %cst_39 = arith.constant dense<0.000000e+00> : vector<16x256xf32>
    %47 = tpu.matmul %11, %46, %cst_39 {dimension_numbers = #tpu.dot_dimension_numbers<[1], [0], [0], [1], [0, 0, 1, 1], [], []>} : vector<16x256xbf16>, vector<256x256xbf16>, vector<16x256xf32> -> vector<16x256xf32>
    %c4_40 = arith.constant 4 : index
    %c0_41 = arith.constant 0 : index
    %c0_42 = arith.constant 0 : index
    %48 = vector.load %arg4[%c4_40, %c0_41, %c0_42] : memref<9x8x16xbf16, #tpu.memory_space<vmem>>, vector<1x8x16xbf16>
    %49 = vector.shape_cast %48 : vector<1x8x16xbf16> to vector<8x16xbf16>
    %50 = arith.truncf %47 : vector<16x256xf32> to vector<16x256xbf16>
    %cst_43 = arith.constant dense<0.000000e+00> : vector<8x256xf32>
    %51 = tpu.matmul %49, %50, %cst_43 {dimension_numbers = #tpu.dot_dimension_numbers<[1], [0], [0], [1], [0, 0, 1, 1], [], []>} : vector<8x16xbf16>, vector<16x256xbf16>, vector<8x256xf32> -> vector<8x256xf32>
    %52 = arith.addf %44, %51 : vector<8x256xf32>
    %c5 = arith.constant 5 : index
    %c0_44 = arith.constant 0 : index
    %c0_45 = arith.constant 0 : index
    %53 = vector.load %arg5[%c5, %c0_44, %c0_45] : memref<9x256x256xbf16, #tpu.memory_space<vmem>>, vector<1x256x256xbf16>
    %54 = vector.shape_cast %53 : vector<1x256x256xbf16> to vector<256x256xbf16>
    %cst_46 = arith.constant dense<0.000000e+00> : vector<16x256xf32>
    %55 = tpu.matmul %11, %54, %cst_46 {dimension_numbers = #tpu.dot_dimension_numbers<[1], [0], [0], [1], [0, 0, 1, 1], [], []>} : vector<16x256xbf16>, vector<256x256xbf16>, vector<16x256xf32> -> vector<16x256xf32>
    %c5_47 = arith.constant 5 : index
    %c0_48 = arith.constant 0 : index
    %c0_49 = arith.constant 0 : index
    %56 = vector.load %arg4[%c5_47, %c0_48, %c0_49] : memref<9x8x16xbf16, #tpu.memory_space<vmem>>, vector<1x8x16xbf16>
    %57 = vector.shape_cast %56 : vector<1x8x16xbf16> to vector<8x16xbf16>
    %58 = arith.truncf %55 : vector<16x256xf32> to vector<16x256xbf16>
    %cst_50 = arith.constant dense<0.000000e+00> : vector<8x256xf32>
    %59 = tpu.matmul %57, %58, %cst_50 {dimension_numbers = #tpu.dot_dimension_numbers<[1], [0], [0], [1], [0, 0, 1, 1], [], []>} : vector<8x16xbf16>, vector<16x256xbf16>, vector<8x256xf32> -> vector<8x256xf32>
    %60 = arith.addf %52, %59 : vector<8x256xf32>
    %c6 = arith.constant 6 : index
    %c0_51 = arith.constant 0 : index
    %c0_52 = arith.constant 0 : index
    %61 = vector.load %arg5[%c6, %c0_51, %c0_52] : memref<9x256x256xbf16, #tpu.memory_space<vmem>>, vector<1x256x256xbf16>
    %62 = vector.shape_cast %61 : vector<1x256x256xbf16> to vector<256x256xbf16>
    %cst_53 = arith.constant dense<0.000000e+00> : vector<16x256xf32>
    %63 = tpu.matmul %11, %62, %cst_53 {dimension_numbers = #tpu.dot_dimension_numbers<[1], [0], [0], [1], [0, 0, 1, 1], [], []>} : vector<16x256xbf16>, vector<256x256xbf16>, vector<16x256xf32> -> vector<16x256xf32>
    %c6_54 = arith.constant 6 : index
    %c0_55 = arith.constant 0 : index
    %c0_56 = arith.constant 0 : index
    %64 = vector.load %arg4[%c6_54, %c0_55, %c0_56] : memref<9x8x16xbf16, #tpu.memory_space<vmem>>, vector<1x8x16xbf16>
    %65 = vector.shape_cast %64 : vector<1x8x16xbf16> to vector<8x16xbf16>
    %66 = arith.truncf %63 : vector<16x256xf32> to vector<16x256xbf16>
    %cst_57 = arith.constant dense<0.000000e+00> : vector<8x256xf32>
    %67 = tpu.matmul %65, %66, %cst_57 {dimension_numbers = #tpu.dot_dimension_numbers<[1], [0], [0], [1], [0, 0, 1, 1], [], []>} : vector<8x16xbf16>, vector<16x256xbf16>, vector<8x256xf32> -> vector<8x256xf32>
    %68 = arith.addf %60, %67 : vector<8x256xf32>
    %c7 = arith.constant 7 : index
    %c0_58 = arith.constant 0 : index
    %c0_59 = arith.constant 0 : index
    %69 = vector.load %arg5[%c7, %c0_58, %c0_59] : memref<9x256x256xbf16, #tpu.memory_space<vmem>>, vector<1x256x256xbf16>
    %70 = vector.shape_cast %69 : vector<1x256x256xbf16> to vector<256x256xbf16>
    %cst_60 = arith.constant dense<0.000000e+00> : vector<16x256xf32>
    %71 = tpu.matmul %11, %70, %cst_60 {dimension_numbers = #tpu.dot_dimension_numbers<[1], [0], [0], [1], [0, 0, 1, 1], [], []>} : vector<16x256xbf16>, vector<256x256xbf16>, vector<16x256xf32> -> vector<16x256xf32>
    %c7_61 = arith.constant 7 : index
    %c0_62 = arith.constant 0 : index
    %c0_63 = arith.constant 0 : index
    %72 = vector.load %arg4[%c7_61, %c0_62, %c0_63] : memref<9x8x16xbf16, #tpu.memory_space<vmem>>, vector<1x8x16xbf16>
    %73 = vector.shape_cast %72 : vector<1x8x16xbf16> to vector<8x16xbf16>
    %74 = arith.truncf %71 : vector<16x256xf32> to vector<16x256xbf16>
    %cst_64 = arith.constant dense<0.000000e+00> : vector<8x256xf32>
    %75 = tpu.matmul %73, %74, %cst_64 {dimension_numbers = #tpu.dot_dimension_numbers<[1], [0], [0], [1], [0, 0, 1, 1], [], []>} : vector<8x16xbf16>, vector<16x256xbf16>, vector<8x256xf32> -> vector<8x256xf32>
    %76 = arith.addf %68, %75 : vector<8x256xf32>
    %c8 = arith.constant 8 : index
    %c0_65 = arith.constant 0 : index
    %c0_66 = arith.constant 0 : index
    %77 = vector.load %arg5[%c8, %c0_65, %c0_66] : memref<9x256x256xbf16, #tpu.memory_space<vmem>>, vector<1x256x256xbf16>
    %78 = vector.shape_cast %77 : vector<1x256x256xbf16> to vector<256x256xbf16>
    %cst_67 = arith.constant dense<0.000000e+00> : vector<16x256xf32>
    %79 = tpu.matmul %11, %78, %cst_67 {dimension_numbers = #tpu.dot_dimension_numbers<[1], [0], [0], [1], [0, 0, 1, 1], [], []>} : vector<16x256xbf16>, vector<256x256xbf16>, vector<16x256xf32> -> vector<16x256xf32>
    %c8_68 = arith.constant 8 : index
    %c0_69 = arith.constant 0 : index
    %c0_70 = arith.constant 0 : index
    %80 = vector.load %arg4[%c8_68, %c0_69, %c0_70] : memref<9x8x16xbf16, #tpu.memory_space<vmem>>, vector<1x8x16xbf16>
    %81 = vector.shape_cast %80 : vector<1x8x16xbf16> to vector<8x16xbf16>
    %82 = arith.truncf %79 : vector<16x256xf32> to vector<16x256xbf16>
    %cst_71 = arith.constant dense<0.000000e+00> : vector<8x256xf32>
    %83 = tpu.matmul %81, %82, %cst_71 {dimension_numbers = #tpu.dot_dimension_numbers<[1], [0], [0], [1], [0, 0, 1, 1], [], []>} : vector<8x16xbf16>, vector<16x256xbf16>, vector<8x256xf32> -> vector<8x256xf32>
    %84 = arith.addf %76, %83 : vector<8x256xf32>
    %c0_72 = arith.constant 0 : index
    %c0_73 = arith.constant 0 : index
    %85 = vector.load %arg6[%c0_72, %c0_73] : memref<8x1xf32, #tpu.memory_space<vmem>>, vector<8x1xf32>
    %86 = vector.broadcast %85 : vector<8x1xf32> to vector<8x256xf32>
    %87 = arith.addf %84, %86 : vector<8x256xf32>
    %c0_74 = arith.constant 0 : index
    %c0_75 = arith.constant 0 : index
    %c0_76 = arith.constant 0 : index
    %88 = vector.load %arg7[%c0_74, %c0_75, %c0_76] : memref<1x8x256xf32, #tpu.memory_space<vmem>>, vector<1x8x256xf32>
    %89 = vector.shape_cast %88 : vector<1x8x256xf32> to vector<8x256xf32>
    %90 = vector.shape_cast %87 : vector<8x256xf32> to vector<1x8x256xf32>
    tpu.vector_store %arg7[%c0_74, %c0_75, %c0_76], %90 {strides = array<i32>} : memref<1x8x256xf32, #tpu.memory_space<vmem>>, vector<1x8x256xf32>,
    return
  }
  func.func @transform_0(%arg0: i32) -> (i32, i32, i32) {
    %c0_i32 = arith.constant 0 : i32
    %c0_i32_0 = arith.constant 0 : i32
    %c0_i32_1 = arith.constant 0 : i32
    return %arg0, %c0_i32, %c0_i32_0 : i32, i32, i32
  }
  func.func @transform_1(%arg0: i32) -> (i32, i32, i32) {
    %c0_i32 = arith.constant 0 : i32
    %c0_i32_0 = arith.constant 0 : i32
    %c0_i32_1 = arith.constant 0 : i32
    return %arg0, %c0_i32, %c0_i32_0 : i32, i32, i32
  }
  func.func @transform_2(%arg0: i32) -> (i32, i32) {
    %c0_i32 = arith.constant 0 : i32
    %c0_i32_0 = arith.constant 0 : i32
    %c0_i32_1 = arith.constant 0 : i32
    return %c0_i32, %c0_i32_0 : i32, i32
  }
  func.func @transform_3(%arg0: i32) -> (i32, i32, i32) {
    %c0_i32 = arith.constant 0 : i32
    %c0_i32_0 = arith.constant 0 : i32
    %c0_i32_1 = arith.constant 0 : i32
    %c0_i32_2 = arith.constant 0 : i32
    return %c0_i32, %c0_i32_0, %c0_i32_1 : i32, i32, i32
  }
  func.func @transform_4(%arg0: i32) -> (i32, i32, i32) {
    %c0_i32 = arith.constant 0 : i32
    %c0_i32_0 = arith.constant 0 : i32
    %c0_i32_1 = arith.constant 0 : i32
    %c0_i32_2 = arith.constant 0 : i32
    return %c0_i32, %c0_i32_0, %c0_i32_1 : i32, i32, i32
  }
  func.func @transform_5(%arg0: i32) -> (i32, i32) {
    %c0_i32 = arith.constant 0 : i32
    %c0_i32_0 = arith.constant 0 : i32
    %c0_i32_1 = arith.constant 0 : i32
    return %c0_i32, %c0_i32_0 : i32, i32
  }
  func.func @transform_6(%arg0: i32) -> (i32, i32, i32) {
    %c0_i32 = arith.constant 0 : i32
    %c0_i32_0 = arith.constant 0 : i32
    %c0_i32_1 = arith.constant 0 : i32
    return %arg0, %c0_i32, %c0_i32_0 : i32, i32, i32
  }
}

</mosaic_0001>

<bundles_post_ra>
// kernel: hfc_conv_forward.1
= control target key start
LH: loop header
LB: loop body
LE: loop exit
PB: predicated region body
PF: predicated region fallthrough
CT: control target
= control target key end

     0   :  { %11 = vsyncpa [#allocation3], 0  ;;  %s5291_s0 = inlined_call_operand.vmem [shape: f32[2,8,256], index: 0, kind: input, shape index: {}]   ;;  %s5292_s1 = inlined_call_operand.vmem [shape: f32[2,1,256], index: 1, kind: input, shape index: {}]   ;;  %s5293_s2 = inlined_call_operand.hbm [shape: bf16[256,256], index: 2, kind: input, shape index: {}]   ;;  %s5294_s3 = inlined_call_operand.hbm [shape: bf16[9,8,16], index: 3, kind: input, shape index: {}]   ;;  %s5295_s4 = inlined_call_operand.hbm [shape: bf16[9,256,256], index: 4, kind: input, shape index: {}]   ;;  %s5296_s5 = inlined_call_operand.vmem [shape: f32[8,1], index: 5, kind: input, shape index: {}]   ;;  %s5297_s6 = inlined_call_operand.vmem [shape: f32[2,8,256], index: 6, kind: output, shape index: {}]  }
   0x1   :  { %12 = vsyncpa [#allocation5], 0  ;;  %s5090_s21 = smov 0  }
   0x2 LB: > { %s210_s24 = sshll.u32 %s5294_s3, 4  ;;  %s5099_s25 = sadd.s32 4294967295, %s5045_s21   ;;  %s5045_s21 = sphi %s5090_s21, %s18_s21   ;;  %s211_s24 = int_to_ptr.hbm [resolvable:$true] %s210_s24 }
   0x3   : > { %p3260_p0 = scmp.ge.s32.totalorder %s5045_s21, 1  ;;  %p185_p1 = scmp.lt.s32.totalorder %s5045_s21, 3 }
   0x4   : > { %p4918_p2 = scmp.eq.s32.totalorder %s5099_s25, 0  ;;  %s5047_s27 = smov [#allocation4]  }
   0x5   : > { %p5104_p3 = pnand %p3260_p0, %p185_p1  ;;  %s212_s28 = sshll.u32 %s5047_s27, 4  ;;  %s213_s28 = int_to_ptr.vmem [resolvable:$true] %s212_s28 }
   0x6   : > { %s196_s7 = sshll.u32 %s5293_s2, 4  ;;  %s5048_s9 = smov [#allocation2]   ;;  %s197_s7 = int_to_ptr.hbm [resolvable:$true] %s196_s7 }
   0x7   : > { %p4908_p4 = pneg %p5104_p3  ;;  %s198_s10 = sshll.u32 %s5048_s9, 4  ;;  %s199_s10 = int_to_ptr.vmem [resolvable:$true] %s198_s10 }
   0x8   : > { %s5049_s11 = smov 64   ;;  %s5050_s12 = smov 4  }
   0x9   : > { %p5115_p5 = pnand %p4918_p2, %p4908_p4  ;;  %s224_s15 = sshll.u32 %s5295_s4, 4  ;;  %s225_s15 = int_to_ptr.hbm [resolvable:$true] %s224_s15 }
   0xa   : > { %s5051_s16 = smov 128   ;;  %s5052_s17 = smov 8  }
   0xb   : > { %4914 = dma.hbm_to_vmem [thread:$0]  (!%p5115_p5), %s211_s24, 576, %s213_s28, [#allocation5], %s5049_s11, %s5049_s11, %s5050_s12  }
   0xc   : > { %4911 = dma.hbm_to_vmem [thread:$0]  (!%p5115_p5), %s197_s7, 4096, %s199_s10, [#allocation3], %s5051_s16, %s5051_s16, %s5052_s17  }
   0xd   : > { %s5053_s18 = smov [#allocation6]   ;;  %260 = sbr.rel (%p5104_p3) target bundleno = 1731 (0x6c3), region = 44 }
   0xe   : > { %s226_s19 = sshll.u32 %s5053_s18, 4  ;;  %s227_s19 = int_to_ptr.vmem [resolvable:$true] %s226_s19 }
   0xf   : > { %4917 = dma.hbm_to_vmem [thread:$0]  (!%p5115_p5), %s225_s15, 36864, %s227_s19, [#allocation5], %s5051_s16, %s5051_s16, %s5052_s17  }
  0x12   : > { %5036 = dma.done.wait (%p4918_p2), [#allocation3], 4096  }
  0x13   : > { %5038 = vsyncadd (%p4918_p2), [#allocation3], 4294963200 }
  0x14   : > { %5040 = dma.done.wait (%p4918_p2), [#allocation5], 37440  }
  0x15   : > { %5042 = vsyncadd (%p4918_p2), [#allocation5], 4294929856  ;;  %p305_p6 = scmp.lt.s32.totalorder %s5099_s25, 1  ;;  %v3332_v0 = vld [vmem:[#allocation2 + $0x70] sm:$0xf]  ;;  %vm590_vm0 = vcmask 1043456  }
  0x16   : > { %v4591_v1 = vld [vmem:[#allocation2 + $0x74] sm:$0xf0]  ;;  %v3396_v2 = vld [vmem:[#allocation2 + $0xf0] sm:$0xf]  ;;  %v4590_v5 = vld [vmem:[#allocation2 + $0x74] sm:$0xf] }
  0x17   : > { %v3333_v3 = vor.u32 %v4591_v1, %v3332_v0  ;;  %v4607_v4 = vld [vmem:[#allocation2 + $0xf4] sm:$0xf0]  ;;  %v3334_v6 = vld [vmem:[#allocation2 + $0x78] sm:$0xf0]  ;;  %v4606_v9 = vld [vmem:[#allocation2 + $0xf4] sm:$0xf] }
  0x18   : > { %v3397_v7 = vor.u32 %v4607_v4, %v3396_v2  ;;  %v3337_v8 = vor.u32 %v4590_v5, %v3334_v6  ;;  %v3398_v10 = vld [vmem:[#allocation2 + $0xf8] sm:$0xf0]  ;;  %v3324_v11 = vld [vmem:[#allocation2 + $0x60] sm:$0xf]  ;;  %v4589_v13 = vld [vmem:[#allocation2 + $0x64] sm:$0xf0] }
  0x19   : > { %522 = vmatpush.bf16.msra.mxu0 %v3333_v3  ;;  %v3401_v12 = vor.u32 %v4606_v9, %v3398_v10  ;;  %v3388_v14 = vld [vmem:[#allocation2 + $0xe0] sm:$0xf]  ;;  %v4605_v15 = vld [vmem:[#allocation2 + $0xe4] sm:$0xf0]  ;;  %v3325_v16 = vor.u32 %v4589_v13, %v3324_v11  ;;  %v4588_v18 = vld [vmem:[#allocation2 + $0x64] sm:$0xf] }
  0x1a   : > { %535 = vmatpush.bf16.msra.mxu1 %v3397_v7  ;;  %548 = vmatpush.bf16.msra.mxu2 %v3337_v8  ;;  %v3389_v17 = vor.u32 %v4605_v15, %v3388_v14  ;;  %v3326_v19 = vld [vmem:[#allocation2 + $0x68] sm:$0xf0]  ;;  %v4604_v20 = vld [vmem:[#allocation2 + $0xe4] sm:$0xf]  ;;  %v3316_v23 = vld [vmem:[#allocation2 + $0x50] sm:$0xf] }
  0x1b   : > { %561 = vmatpush.bf16.msra.mxu3 %v3401_v12  ;;  %v3329_v21 = vor.u32 %v4588_v18, %v3326_v19  ;;  %v3390_v22 = vld [vmem:[#allocation2 + $0xe8] sm:$0xf0]  ;;  %v4587_v24 = vld [vmem:[#allocation2 + $0x54] sm:$0xf0]  ;;  %v3380_v26 = vld [vmem:[#allocation2 + $0xd0] sm:$0xf] }
  0x1c   : > { %v3393_v25 = vor.u32 %v4604_v20, %v3390_v22  ;;  %v4603_v27 = vld [vmem:[#allocation2 + $0xd4] sm:$0xf0]  ;;  %v4586_v28 = vld [vmem:[#allocation2 + $0x54] sm:$0xf]  ;;  %v3317_v29 = vor.u32 %v4587_v24, %v3316_v23  ;;  %v3318_v30 = vld [vmem:[#allocation2 + $0x58] sm:$0xf0] }
  0x1d   : > { %523 = vmatpush.bf16.msra.mxu0 %v3325_v16  ;;  %v4602_v31 = vld [vmem:[#allocation2 + $0xd4] sm:$0xf]  ;;  %v3382_v32 = vld [vmem:[#allocation2 + $0xd8] sm:$0xf0]  ;;  %v3381_v33 = vor.u32 %v4603_v27, %v3380_v26  ;;  %v3321_v34 = vor.u32 %v4586_v28, %v3318_v30  ;;  %v3308_v35 = vld [vmem:[#allocation2 + $0x40] sm:$0xf] }
  0x1e   : > { %536 = vmatpush.bf16.msra.mxu1 %v3389_v17  ;;  %549 = vmatpush.bf16.msra.mxu2 %v3329_v21  ;;  %v4585_v36 = vld [vmem:[#allocation2 + $0x44] sm:$0xf0]  ;;  %v3372_v37 = vld [vmem:[#allocation2 + $0xc0] sm:$0xf]  ;;  %v3385_v38 = vor.u32 %v4602_v31, %v3382_v32  ;;  %v4584_v40 = vld [vmem:[#allocation2 + $0x44] sm:$0xf] }
  0x1f   : > { %562 = vmatpush.bf16.msra.mxu3 %v3393_v25  ;;  %v4601_v39 = vld [vmem:[#allocation2 + $0xc4] sm:$0xf0]  ;;  %v3310_v41 = vld [vmem:[#allocation2 + $0x48] sm:$0xf0]  ;;  %v4600_v42 = vld [vmem:[#allocation2 + $0xc4] sm:$0xf]  ;;  %v3309_v44 = vor.u32 %v4585_v36, %v3308_v35 }
  0x20   : > { %v3374_v43 = vld [vmem:[#allocation2 + $0xc8] sm:$0xf0]  ;;  %s5301_s25 = smov (!%p305_p6, %s5099_s25), 1  ;;  %v3373_v45 = vor.u32 %v4601_v39, %v3372_v37  ;;  %v3313_v46 = vor.u32 %v4584_v40, %v3310_v41  ;;  %v3300_v47 = vld [vmem:[#allocation2 + $0x30] sm:$0xf]  ;;  %vm1103_vm1 = vcmask 130048  }
  0x21   : > { %524 = vmatpush.bf16.msra.mxu0 %v3317_v29  ;;  %v4583_v48 = vld [vmem:[#allocation2 + $0x34] sm:$0xf0]  ;;  %v3364_v49 = vld [vmem:[#allocation2 + $0xb0] sm:$0xf]  ;;  %v3377_v50 = vor.u32 %v4600_v42, %v3374_v43  ;;  %v4582_v52 = vld [vmem:[#allocation2 + $0x34] sm:$0xf] }
  0x22   : > { %537 = vmatpush.bf16.msra.mxu1 %v3381_v33  ;;  %550 = vmatpush.bf16.msra.mxu2 %v3321_v34  ;;  %v4599_v51 = vld [vmem:[#allocation2 + $0xb4] sm:$0xf0]  ;;  %v3302_v53 = vld [vmem:[#allocation2 + $0x38] sm:$0xf0]  ;;  %v4598_v54 = vld [vmem:[#allocation2 + $0xb4] sm:$0xf]  ;;  %v3301_v56 = vor.u32 %v4583_v48, %v3300_v47 }
  0x23   : > { %563 = vmatpush.bf16.msra.mxu3 %v3385_v38  ;;  %v3366_v55 = vld [vmem:[#allocation2 + $0xb8] sm:$0xf0]  ;;  %s4574_s20 = sshll.u32 %s5301_s25, 4  ;;  %v3365_v57 = vor.u32 %v4599_v51, %v3364_v49  ;;  %v3305_v58 = vor.u32 %v4582_v52, %v3302_v53  ;;  %v3292_v59 = vld [vmem:[#allocation2 + $0x20] sm:$0xf]  ;;  %s3271_s26 = sshll.u32 %s5301_s25, 1 }
  0x24   : > { %v4581_v60 = vld [vmem:[#allocation2 + $0x24] sm:$0xf0]  ;;  %v3356_v61 = vld [vmem:[#allocation2 + $0xa0] sm:$0xf]  ;;  %v3369_v62 = vor.u32 %v4598_v54, %v3366_v55  ;;  %v4580_v0 = vld [vmem:[#allocation2 + $0x24] sm:$0xf]  ;;  %s309_s24 = scalar_lea.vmem %s5291_s0, %s4574_s20  ;;  %s313_s29 = scalar_lea.vmem %s5292_s1, %s3271_s26 }
  0x25   : > { %525 = vmatpush.bf16.msra.mxu0 %v3309_v44  ;;  %v4597_v63 = vld [vmem:[#allocation2 + $0xa4] sm:$0xf0]  ;;  %v3294_v1 = vld [vmem:[#allocation2 + $0x28] sm:$0xf0]  ;;  %v4596_v2 = vld [vmem:[#allocation2 + $0xa4] sm:$0xf]  ;;  %v3293_v4 = vor.u32 %v4581_v60, %v3292_v59  ;;  %s318_s10 = scalar_lea.vmem %s5297_s6, %s4574_s20 }
  0x26   : > { %538 = vmatpush.bf16.msra.mxu1 %v3373_v45  ;;  %551 = vmatpush.bf16.msra.mxu2 %v3313_v46  ;;  %v3358_v3 = vld [vmem:[#allocation2 + $0xa8] sm:$0xf0]  ;;  %v3284_v5 = vld [vmem:[#allocation2 + $0x10] sm:$0xf]  ;;  %v4579_v6 = vld [vmem:[#allocation2 + $0x14] sm:$0xf0]  ;;  %v3357_v7 = vor.u32 %v4597_v63, %v3356_v61  ;;  %v3297_v8 = vor.u32 %v4580_v0, %v3294_v1 }
  0x27   : > { %564 = vmatpush.bf16.msra.mxu3 %v3377_v50  ;;  %v3348_v9 = vld [vmem:[#allocation2 + $0x90] sm:$0xf]  ;;  %v4595_v10 = vld [vmem:[#allocation2 + $0x94] sm:$0xf0]  ;;  %v4578_v11 = vld [vmem:[#allocation2 + $0x14] sm:$0xf]  ;;  %v3361_v12 = vor.u32 %v4596_v2, %v3358_v3  ;;  %v3285_v19 = vor.u32 %v4579_v6, %v3284_v5 }
  0x28   : > { %v3286_v13 = vld [vmem:[#allocation2 + $0x18] sm:$0xf0]  ;;  %v5150_v14 = vld [vmem:[%s309_s24] sm:$0xff]  ;;  %v5152_v15 = vld [vmem:[%s309_s24 + $0x8] sm:$0xff]  ;;  %v3349_v21 = vor.u32 %v4595_v10, %v3348_v9 }
  0x29   : > { %526 = vmatpush.bf16.msra.mxu0 %v3301_v56  ;;  %v4594_v16 = vld [vmem:[#allocation2 + $0x94] sm:$0xf]  ;;  %v3350_v17 = vld [vmem:[#allocation2 + $0x98] sm:$0xf0]  ;;  %v322_v18 = vpack.c.bf16 %v5152_v15, %v5150_v14  ;;  %v3276_v20 = vld [vmem:[#allocation2] sm:$0xf]  ;;  %v3289_v22 = vor.u32 %v4578_v11, %v3286_v13 }
  0x2a   : > { %539 = vmatpush.bf16.msra.mxu1 %v3365_v57  ;;  %552 = vmatpush.bf16.msra.mxu2 %v3305_v58  ;;  %v4577_v23 = vld [vmem:[#allocation2 + $0x4] sm:$0xf0]  ;;  %v3340_v24 = vld [vmem:[#allocation2 + $0x80] sm:$0xf]  ;;  %v3353_v26 = vor.u32 %v4594_v16, %v3350_v17  ;;  %v4576_v27 = vld [vmem:[#allocation2 + $0x4] sm:$0xf] }
  0x2b   : > { %565 = vmatpush.bf16.msra.mxu3 %v3369_v62  ;;  %v4593_v25 = vld [vmem:[#allocation2 + $0x84] sm:$0xf0]  ;;  %v3278_v28 = vld [vmem:[#allocation2 + $0x8] sm:$0xf0]  ;;  %v4592_v29 = vld [vmem:[#allocation2 + $0x84] sm:$0xf]  ;;  %v356_v31 = vunpack.c.l.b16 %v322_v18  ;;  %v3277_v34 = vor.u32 %v4577_v23, %v3276_v20  ;;  %v357_v35 = vunpack.c.h.b16 %v322_v18 }
  0x2c   : > { %v3342_v30 = vld [vmem:[#allocation2 + $0x88] sm:$0xf0]  ;;  %v3460_v32 = vld [vmem:[#allocation6 + $0x70] sm:$0xf]  ;;  %v4623_v33 = vld [vmem:[#allocation6 + $0x74] sm:$0xf0]  ;;  %v3341_v38 = vor.u32 %v4593_v25, %v3340_v24  ;;  %v3281_v39 = vor.u32 %v4576_v27, %v3278_v28 }
  0x2d   : > { %527 = vmatpush.bf16.msra.mxu0 %v3293_v4  ;;  %v3524_v36 = vld [vmem:[#allocation6 + $0xf0] sm:$0xf]  ;;  %v4639_v37 = vld [vmem:[#allocation6 + $0xf4] sm:$0xf0]  ;;  %v3345_v40 = vor.u32 %v4592_v29, %v3342_v30  ;;  %v3461_v41 = vor.u32 %v4623_v33, %v3460_v32  ;;  %v4622_v42 = vld [vmem:[#allocation6 + $0x74] sm:$0xf]  ;;  %v5156_v45 = vpack.c.b16 %v356_v31, %v356_v31  ;;  %v5158_v50 = vpack.c.b16 %v357_v35, %v357_v35 }
  0x2e   : > { %540 = vmatpush.bf16.msra.mxu1 %v3357_v7  ;;  %553 = vmatpush.bf16.msra.mxu2 %v3297_v8  ;;  %v3462_v43 = vld [vmem:[#allocation6 + $0x78] sm:$0xf0]  ;;  %v4638_v44 = vld [vmem:[#allocation6 + $0xf4] sm:$0xf]  ;;  %v3525_v46 = vor.u32 %v4639_v37, %v3524_v36  ;;  %v3452_v48 = vld [vmem:[#allocation6 + $0x60] sm:$0xf] }
  0x2f   : > { %566 = vmatpush.bf16.msra.mxu3 %v3361_v12  ;;  %v3526_v47 = vld [vmem:[#allocation6 + $0xf8] sm:$0xf0]  ;;  %v4621_v49 = vld [vmem:[#allocation6 + $0x64] sm:$0xf0]  ;;  %v3516_v51 = vld [vmem:[#allocation6 + $0xe0] sm:$0xf]  ;;  %v3465_v53 = vor.u32 %v4622_v42, %v3462_v43 }
  0x30   : > { %v4637_v52 = vld [vmem:[#allocation6 + $0xe4] sm:$0xf0]  ;;  %v3529_v54 = vor.u32 %v4638_v44, %v3526_v47  ;;  %v3453_v55 = vor.u32 %v4621_v49, %v3452_v48  ;;  %v4620_v56 = vld [vmem:[#allocation6 + $0x64] sm:$0xf]  ;;  %v3454_v57 = vld [vmem:[#allocation6 + $0x68] sm:$0xf0] }
  0x31   : > { %528 = vmatpush.bf16.msra.mxu0 %v3285_v19  ;;  %v4636_v58 = vld [vmem:[#allocation6 + $0xe4] sm:$0xf]  ;;  %v3517_v59 = vor.u32 %v4637_v52, %v3516_v51  ;;  %v3518_v60 = vld [vmem:[#allocation6 + $0xe8] sm:$0xf0]  ;;  %v3444_v61 = vld [vmem:[#allocation6 + $0x50] sm:$0xf]  ;;  %v3457_v1 = vor.u32 %v4620_v56, %v3454_v57 }
  0x32   : > { %541 = vmatpush.bf16.msra.mxu1 %v3349_v21  ;;  %554 = vmatpush.bf16.msra.mxu2 %v3289_v22  ;;  %v4619_v62 = vld [vmem:[#allocation6 + $0x54] sm:$0xf0]  ;;  %v3508_v63 = vld [vmem:[#allocation6 + $0xd0] sm:$0xf]  ;;  %v3521_v2 = vor.u32 %v4636_v58, %v3518_v60  ;;  %v4618_v4 = vld [vmem:[#allocation6 + $0x54] sm:$0xf] }
  0x33   : > { %567 = vmatpush.bf16.msra.mxu3 %v3353_v26  ;;  %v4635_v0 = vld [vmem:[#allocation6 + $0xd4] sm:$0xf0]  ;;  %v3445_v3 = vor.u32 %v4619_v62, %v3444_v61  ;;  %v3446_v5 = vld [vmem:[#allocation6 + $0x58] sm:$0xf0]  ;;  %v4634_v6 = vld [vmem:[#allocation6 + $0xd4] sm:$0xf] }
  0x34   : > { %v3509_v7 = vor.u32 %v4635_v0, %v3508_v63  ;;  %v3510_v8 = vld [vmem:[#allocation6 + $0xd8] sm:$0xf0]  ;;  %v3436_v9 = vld [vmem:[#allocation6 + $0x40] sm:$0xf]  ;;  %v4617_v10 = vld [vmem:[#allocation6 + $0x44] sm:$0xf0]  ;;  %v3449_v13 = vor.u32 %v4618_v4, %v3446_v5 }
  0x35   : > { %529 = vmatpush.bf16.msra.mxu0 %v3277_v34  ;;  %v3500_v11 = vld [vmem:[#allocation6 + $0xc0] sm:$0xf]  ;;  %v4633_v12 = vld [vmem:[#allocation6 + $0xc4] sm:$0xf0]  ;;  %v3513_v16 = vor.u32 %v4634_v6, %v3510_v8  ;;  %v3437_v17 = vor.u32 %v4617_v10, %v3436_v9  ;;  %v4616_v18 = vld [vmem:[#allocation6 + $0x44] sm:$0xf] }
  0x36   : > { %542 = vmatpush.bf16.msra.mxu1 %v3341_v38  ;;  %555 = vmatpush.bf16.msra.mxu2 %v3281_v39  ;;  %v3438_v19 = vld [vmem:[#allocation6 + $0x48] sm:$0xf0]  ;;  %v4632_v20 = vld [vmem:[#allocation6 + $0xc4] sm:$0xf]  ;;  %v3501_v21 = vor.u32 %v4633_v12, %v3500_v11  ;;  %v3428_v23 = vld [vmem:[#allocation6 + $0x30] sm:$0xf] }
  0x37   : > { %568 = vmatpush.bf16.msra.mxu3 %v3345_v40  ;;  %v3502_v22 = vld [vmem:[#allocation6 + $0xc8] sm:$0xf0]  ;;  %v4615_v24 = vld [vmem:[#allocation6 + $0x34] sm:$0xf0]  ;;  %v3492_v25 = vld [vmem:[#allocation6 + $0xb0] sm:$0xf]  ;;  %v3441_v27 = vor.u32 %v4616_v18, %v3438_v19 }
  0x38   : > { %530 = vmatmul.bf16.vlgmr.msra.gmra.mxu0 %v5156_v45  ;;  %v4631_v26 = vld [vmem:[#allocation6 + $0xb4] sm:$0xf0]  ;;  %v3505_v28 = vor.u32 %v4632_v20, %v3502_v22  ;;  %v3429_v29 = vor.u32 %v4615_v24, %v3428_v23  ;;  %v4614_v30 = vld [vmem:[#allocation6 + $0x34] sm:$0xf]  ;;  %v3430_v31 = vld [vmem:[#allocation6 + $0x38] sm:$0xf0] }
  0x39   : > { %791 = vmatpush.bf16.msrb.mxu0 %v3461_v41  ;;  %543 = vmatmul.bf16.vlgmr.msra.gmra.mxu1 %v5158_v50  ;;  %v4630_v32 = vld [vmem:[#allocation6 + $0xb4] sm:$0xf]  ;;  %v3493_v33 = vor.u32 %v4631_v26, %v3492_v25  ;;  %v3494_v34 = vld [vmem:[#allocation6 + $0xb8] sm:$0xf0]  ;;  %v3420_v35 = vld [vmem:[#allocation6 + $0x20] sm:$0xf]  ;;  %v3433_v39 = vor.u32 %v4614_v30, %v3430_v31 }
  0x3a   : > { %805 = vmatpush.bf16.msrb.mxu1 %v3525_v46  ;;  %556 = vmatmul.bf16.vlgmr.msra.gmra.mxu2 %v5156_v45  ;;  %v4613_v36 = vld [vmem:[#allocation6 + $0x24] sm:$0xf0]  ;;  %v3484_v37 = vld [vmem:[#allocation6 + $0xa0] sm:$0xf]  ;;  %v3497_v40 = vor.u32 %v4630_v32, %v3494_v34  ;;  %v4612_v42 = vld [vmem:[#allocation6 + $0x24] sm:$0xf] }
  0x3b   : > { %569 = vmatmul.bf16.vlgmr.msra.gmra.mxu3 %v5158_v50  ;;  %819 = vmatpush.bf16.msrb.mxu2 %v3465_v53  ;;  %v4629_v38 = vld [vmem:[#allocation6 + $0xa4] sm:$0xf0]  ;;  %v3421_v41 = vor.u32 %v4613_v36, %v3420_v35  ;;  %v3422_v43 = vld [vmem:[#allocation6 + $0x28] sm:$0xf0]  ;;  %v4628_v46 = vld [vmem:[#allocation6 + $0xa4] sm:$0xf] }
  0x3c   : > { %833 = vmatpush.bf16.msrb.mxu3 %v3529_v54  ;;  %v3485_v44 = vor.u32 %v4629_v38, %v3484_v37  ;;  %v3486_v47 = vld [vmem:[#allocation6 + $0xa8] sm:$0xf0]  ;;  %v3425_v48 = vor.u32 %v4612_v42, %v3422_v43  ;;  %v3412_v51 = vld [vmem:[#allocation6 + $0x10] sm:$0xf]  ;;  %v4611_v52 = vld [vmem:[#allocation6 + $0x14] sm:$0xf0] }
  0x3d   : > { %792 = vmatpush.bf16.msrb.mxu0 %v3453_v55  ;;  %v3489_v49 = vor.u32 %v4628_v46, %v3486_v47  ;;  %v3476_v53 = vld [vmem:[#allocation6 + $0x90] sm:$0xf]  ;;  %v3413_v54 = vor.u32 %v4611_v52, %v3412_v51  ;;  %v4627_v55 = vld [vmem:[#allocation6 + $0x94] sm:$0xf0]  ;;  %v4610_v56 = vld [vmem:[#allocation6 + $0x14] sm:$0xf] }
  0x3e   : > { %806 = vmatpush.bf16.msrb.mxu1 %v3517_v59  ;;  %v3414_v57 = vld [vmem:[#allocation6 + $0x18] sm:$0xf0]  ;;  %v3477_v58 = vor.u32 %v4627_v55, %v3476_v53  ;;  %v4626_v60 = vld [vmem:[#allocation6 + $0x94] sm:$0xf]  ;;  %v3404_v63 = vld [vmem:[#allocation6] sm:$0xf] }
  0x3f   : > { %820 = vmatpush.bf16.msrb.mxu2 %v3457_v1  ;;  %v3417_v59 = vor.u32 %v4610_v56, %v3414_v57  ;;  %v3478_v61 = vld [vmem:[#allocation6 + $0x98] sm:$0xf0]  ;;  %v4609_v0 = vld [vmem:[#allocation6 + $0x4] sm:$0xf0]  ;;  %v3468_v1 = vld [vmem:[#allocation6 + $0x80] sm:$0xf] }
  0x40   : > { %834 = vmatpush.bf16.msrb.mxu3 %v3521_v2  ;;  %v3481_v62 = vor.u32 %v4626_v60, %v3478_v61  ;;  %v3405_v2 = vor.u32 %v4609_v0, %v3404_v63  ;;  %v4608_v4 = vld [vmem:[#allocation6 + $0x4] sm:$0xf]  ;;  %v3406_v6 = vld [vmem:[#allocation6 + $0x8] sm:$0xf0]  ;;  %v3588_v10 = vld [vmem:[#allocation6 + $0x170] sm:$0xf] }
  0x41   : > { %793 = vmatpush.bf16.msrb.mxu0 %v3445_v3  ;;  %v4625_v3 = vld [vmem:[#allocation6 + $0x84] sm:$0xf0]  ;;  %v3409_v8 = vor.u32 %v4608_v4, %v3406_v6  ;;  %v3470_v9 = vld [vmem:[#allocation6 + $0x88] sm:$0xf0]  ;;  %v4655_v11 = vld [vmem:[#allocation6 + $0x174] sm:$0xf0] }
  0x42   : > { %807 = vmatpush.bf16.msrb.mxu1 %v3509_v7  ;;  %v3469_v5 = vor.u32 %v4625_v3, %v3468_v1  ;;  %v4624_v7 = vld [vmem:[#allocation6 + $0x84] sm:$0xf]  ;;  %v4654_v18 = vld [vmem:[#allocation6 + $0x174] sm:$0xf]  ;;  %v3590_v20 = vld [vmem:[#allocation6 + $0x178] sm:$0xf0] }
  0x43   : > { %821 = vmatpush.bf16.msrb.mxu2 %v3449_v13  ;;  %v3473_v12 = vor.u32 %v4624_v7, %v3470_v9  ;;  %v3589_v13 = vor.u32 %v4655_v11, %v3588_v10  ;;  %v3654_v22 = vld [vmem:[#allocation6 + $0x1f8] sm:$0xf0]  ;;  %v3593_v23 = vor.u32 %v4654_v18, %v3590_v20  ;;  %v3580_v25 = vld [vmem:[#allocation6 + $0x160] sm:$0xf]  ;;  %v4653_v26 = vld [vmem:[#allocation6 + $0x164] sm:$0xf0] }
  0x44   : > { %835 = vmatpush.bf16.msrb.mxu3 %v3513_v16  ;;  %v3652_v16 = vld [vmem:[#allocation6 + $0x1f0] sm:$0xf]  ;;  %v4652_v30 = vld [vmem:[#allocation6 + $0x164] sm:$0xf]  ;;  %v3582_v31 = vld [vmem:[#allocation6 + $0x168] sm:$0xf0] }
  0x45   : > { %794 = vmatpush.bf16.msrb.mxu0 %v3437_v17  ;;  %v4671_v17 = vld [vmem:[#allocation6 + $0x1f4] sm:$0xf0]  ;;  %v4668_v34 = vld [vmem:[#allocation6 + $0x1e4] sm:$0xf]  ;;  %v3646_v35 = vld [vmem:[#allocation6 + $0x1e8] sm:$0xf0] }
  0x46   : > { %808 = vmatpush.bf16.msrb.mxu1 %v3501_v21  ;;  %v3653_v19 = vor.u32 %v4671_v17, %v3652_v16  ;;  %v4670_v21 = vld [vmem:[#allocation6 + $0x1f4] sm:$0xf]  ;;  %v3649_v36 = vor.u32 %v4668_v34, %v3646_v35  ;;  %v3572_v37 = vld [vmem:[#allocation6 + $0x150] sm:$0xf]  ;;  %v4651_v38 = vld [vmem:[#allocation6 + $0x154] sm:$0xf0] }
  0x47   : > { %822 = vmatpush.bf16.msrb.mxu2 %v3441_v27  ;;  %v3657_v24 = vor.u32 %v4670_v21, %v3654_v22  ;;  %v3644_v27 = vld [vmem:[#allocation6 + $0x1e0] sm:$0xf]  ;;  %v4650_v42 = vld [vmem:[#allocation6 + $0x154] sm:$0xf]  ;;  %v3574_v43 = vld [vmem:[#allocation6 + $0x158] sm:$0xf0] }
  0x48   : > { %836 = vmatpush.bf16.msrb.mxu3 %v3505_v28  ;;  %v3581_v28 = vor.u32 %v4653_v26, %v3580_v25  ;;  %v4666_v46 = vld [vmem:[#allocation6 + $0x1d4] sm:$0xf]  ;;  %v3638_v47 = vld [vmem:[#allocation6 + $0x1d8] sm:$0xf0]  ;;  %v3564_v51 = vld [vmem:[#allocation6 + $0x140] sm:$0xf] }
  0x49   : > { %795 = vmatpush.bf16.msrb.mxu0 %v3429_v29  ;;  %v4669_v29 = vld [vmem:[#allocation6 + $0x1e4] sm:$0xf0]  ;;  %v3628_v53 = vld [vmem:[#allocation6 + $0x1c0] sm:$0xf]  ;;  %v4648_v56 = vld [vmem:[#allocation6 + $0x144] sm:$0xf] }
  0x4a   : > { %809 = vmatpush.bf16.msrb.mxu1 %v3493_v33  ;;  %v3645_v32 = vor.u32 %v4669_v29, %v3644_v27  ;;  %v3585_v33 = vor.u32 %v4652_v30, %v3582_v31  ;;  %v4649_v52 = vld [vmem:[#allocation6 + $0x144] sm:$0xf0]  ;;  %v3566_v57 = vld [vmem:[#allocation6 + $0x148] sm:$0xf0]  ;;  %v3556_v63 = vld [vmem:[#allocation6 + $0x130] sm:$0xf] }
  0x4b   : > { %823 = vmatpush.bf16.msrb.mxu2 %v3433_v39  ;;  %v3636_v39 = vld [vmem:[#allocation6 + $0x1d0] sm:$0xf]  ;;  %v4665_v55 = vld [vmem:[#allocation6 + $0x1c4] sm:$0xf0]  ;;  %v3630_v60 = vld [vmem:[#allocation6 + $0x1c8] sm:$0xf0]  ;;  %v3569_v61 = vor.u32 %v4648_v56, %v3566_v57 }
  0x4c   : > { %837 = vmatpush.bf16.msrb.mxu3 %v3497_v40  ;;  %v3573_v40 = vor.u32 %v4651_v38, %v3572_v37  ;;  %v4647_v0 = vld [vmem:[#allocation6 + $0x134] sm:$0xf0]  ;;  %v3620_v1 = vld [vmem:[#allocation6 + $0x1b0] sm:$0xf]  ;;  %v4646_v4 = vld [vmem:[#allocation6 + $0x134] sm:$0xf] }
  0x4d   : > { %796 = vmatpush.bf16.msrb.mxu0 %v3421_v41  ;;  %v4667_v41 = vld [vmem:[#allocation6 + $0x1d4] sm:$0xf0]  ;;  %v3622_v9 = vld [vmem:[#allocation6 + $0x1b8] sm:$0xf0]  ;;  %v3548_v10 = vld [vmem:[#allocation6 + $0x120] sm:$0xf] }
  0x4e   : > { %810 = vmatpush.bf16.msrb.mxu1 %v3485_v44  ;;  %v3637_v44 = vor.u32 %v4667_v41, %v3636_v39  ;;  %v4663_v3 = vld [vmem:[#allocation6 + $0x1b4] sm:$0xf0]  ;;  %v4661_v16 = vld [vmem:[#allocation6 + $0x1a4] sm:$0xf0]  ;;  %v4644_v18 = vld [vmem:[#allocation6 + $0x124] sm:$0xf] }
  0x4f   : > { %824 = vmatpush.bf16.msrb.mxu2 %v3425_v48  ;;  %v3577_v48 = vor.u32 %v4650_v42, %v3574_v43  ;;  %v3621_v6 = vor.u32 %v4663_v3, %v3620_v1  ;;  %v4660_v20 = vld [vmem:[#allocation6 + $0x1a4] sm:$0xf]  ;;  %v3614_v22 = vld [vmem:[#allocation6 + $0x1a8] sm:$0xf0]  ;;  %v3604_v27 = vld [vmem:[#allocation6 + $0x190] sm:$0xf] }
  0x50   : > { %838 = vmatpush.bf16.msrb.mxu3 %v3489_v49  ;;  %v3641_v49 = vor.u32 %v4666_v46, %v3638_v47  ;;  %v3617_v26 = vor.u32 %v4660_v20, %v3614_v22  ;;  %v4642_v29 = vld [vmem:[#allocation6 + $0x114] sm:$0xf]  ;;  %v3542_v30 = vld [vmem:[#allocation6 + $0x118] sm:$0xf0]  ;;  %v3532_v35 = vld [vmem:[#allocation6 + $0x100] sm:$0xf] }
  0x51   : > { %797 = vmatpush.bf16.msrb.mxu0 %v3413_v54  ;;  %v3565_v54 = vor.u32 %v4649_v52, %v3564_v51  ;;  %v4658_v31 = vld [vmem:[#allocation6 + $0x194] sm:$0xf]  ;;  %v3545_v37 = vor.u32 %v4642_v29, %v3542_v30  ;;  %v3596_v39 = vld [vmem:[#allocation6 + $0x180] sm:$0xf]  ;;  %v4640_v41 = vld [vmem:[#allocation6 + $0x104] sm:$0xf] }
  0x52   : > { %811 = vmatpush.bf16.msrb.mxu1 %v3477_v58  ;;  %v3629_v58 = vor.u32 %v4665_v55, %v3628_v53  ;;  %v3534_v43 = vld [vmem:[#allocation6 + $0x108] sm:$0xf0]  ;;  %v4682_v29 = vld [vmem:[#allocation6 + $0x254] sm:$0xf]  ;;  %v3706_v30 = vld [vmem:[#allocation6 + $0x258] sm:$0xf0] }
  0x53   : > { %825 = vmatpush.bf16.msrb.mxu2 %v3417_v59  ;;  %v4664_v59 = vld [vmem:[#allocation6 + $0x1c4] sm:$0xf]  ;;  %v3598_v46 = vld [vmem:[#allocation6 + $0x188] sm:$0xf0]  ;;  %v3537_v52 = vor.u32 %v4640_v41, %v3534_v43 }
  0x54   : > { %839 = vmatpush.bf16.msrb.mxu3 %v3481_v62  ;;  %v3633_v62 = vor.u32 %v4664_v59, %v3630_v60  ;;  %v3714_v22 = vld [vmem:[#allocation6 + $0x268] sm:$0xf0] }
  0x55   : > { %798 = vmatpush.bf16.msrb.mxu0 %v3405_v2  ;;  %v3557_v2 = vor.u32 %v4647_v0, %v3556_v63  ;;  %v3698_v41 = vld [vmem:[#allocation6 + $0x248] sm:$0xf0] }
  0x56   : > { %812 = vmatpush.bf16.msrb.mxu1 %v3469_v5  ;;  %v3558_v5 = vld [vmem:[#allocation6 + $0x138] sm:$0xf0] }
  0x57   : > { %826 = vmatpush.bf16.msrb.mxu2 %v3409_v8  ;;  %v3561_v7 = vor.u32 %v4646_v4, %v3558_v5  ;;  %v4662_v8 = vld [vmem:[#allocation6 + $0x1b4] sm:$0xf] }
  0x58   : > { %840 = vmatpush.bf16.msrb.mxu3 %v3473_v12  ;;  %v3625_v11 = vor.u32 %v4662_v8, %v3622_v9  ;;  %v4645_v12 = vld [vmem:[#allocation6 + $0x124] sm:$0xf0] }
  0x59   : > { %1043 = vmatpush.bf16.msra.mxu0 %v3589_v13  ;;  %v3612_v13 = vld [vmem:[#allocation6 + $0x1a0] sm:$0xf]  ;;  %v3549_v17 = vor.u32 %v4645_v12, %v3548_v10  ;;  %v3722_v12 = vld [vmem:[#allocation6 + $0x278] sm:$0xf0] }
  0x5a   : > { %1057 = vmatpush.bf16.msra.mxu1 %v3653_v19  ;;  %v3550_v19 = vld [vmem:[#allocation6 + $0x128] sm:$0xf0]  ;;  %v3613_v21 = vor.u32 %v4661_v16, %v3612_v13 }
  0x5b   : > { %1071 = vmatpush.bf16.msra.mxu2 %v3593_v23  ;;  %v3540_v23 = vld [vmem:[#allocation6 + $0x110] sm:$0xf]  ;;  %v3553_v25 = vor.u32 %v4644_v18, %v3550_v19 }
  0x5c   : > { %1085 = vmatpush.bf16.msra.mxu3 %v3657_v24  ;;  %v4643_v24 = vld [vmem:[#allocation6 + $0x114] sm:$0xf0] }
  0x5d   : > { %1044 = vmatpush.bf16.msra.mxu0 %v3581_v28  ;;  %v4659_v28 = vld [vmem:[#allocation6 + $0x194] sm:$0xf0] }
  0x5e   : > { %1058 = vmatpush.bf16.msra.mxu1 %v3645_v32  ;;  %v3606_v32 = vld [vmem:[#allocation6 + $0x198] sm:$0xf0]  ;;  %v3605_v34 = vor.u32 %v4659_v28, %v3604_v27 }
  0x5f   : > { %1072 = vmatpush.bf16.msra.mxu2 %v3585_v33  ;;  %v3541_v33 = vor.u32 %v4643_v24, %v3540_v23  ;;  %v3609_v38 = vor.u32 %v4658_v31, %v3606_v32  ;;  %v847_v23 = vld [vmem:[#allocation4] sm:$0xf] }
  0x60   : > { %1086 = vmatpush.bf16.msra.mxu3 %v3649_v36  ;;  %v4641_v36 = vld [vmem:[#allocation6 + $0x104] sm:$0xf0] }
  0x61   : > { %1045 = vmatpush.bf16.msra.mxu0 %v3573_v40  ;;  %v4657_v40 = vld [vmem:[#allocation6 + $0x184] sm:$0xf0] }
  0x62   : > { %1059 = vmatpush.bf16.msra.mxu1 %v3637_v44  ;;  %v4656_v44 = vld [vmem:[#allocation6 + $0x184] sm:$0xf] }
  0x63   : > { %1073 = vmatpush.bf16.msra.mxu2 %v3577_v48  ;;  %v3533_v48 = vor.u32 %v4641_v36, %v3532_v35  ;;  %v3601_v53 = vor.u32 %v4656_v44, %v3598_v46  ;;  %v4698_v44 = vld [vmem:[#allocation6 + $0x2d4] sm:$0xf]  ;;  %v3770_v46 = vld [vmem:[#allocation6 + $0x2d8] sm:$0xf0] }
  0x64   : > { %1087 = vmatpush.bf16.msra.mxu3 %v3641_v49  ;;  %v3597_v49 = vor.u32 %v4657_v40, %v3596_v39  ;;  %v3778_v39 = vld [vmem:[#allocation6 + $0x2e8] sm:$0xf0]  ;;  %v4680_v40 = vld [vmem:[#allocation6 + $0x244] sm:$0xf] }
  0x65   : > { %1046 = vmatpush.bf16.msra.mxu0 %v3565_v54  ;;  %v576_v54 = vld [vmem:[%s313_s29] sm:$0x3]  ;;  %v3701_v43 = vor.u32 %v4680_v40, %v3698_v41  ;;  %v4699_v40 = vld [vmem:[#allocation6 + $0x2d4] sm:$0xf0]  ;;  %v4690_v41 = vld [vmem:[#allocation6 + $0x294] sm:$0xf] }
  0x66   : > { %1060 = vmatpush.bf16.msra.mxu1 %v3629_v58  ;;  %v578_v56 = vperm.slane %v576_v54, 0 }
  0x67   : > { %1074 = vmatpush.bf16.msra.mxu2 %v3569_v61  ;;  %v579_v61 = vperm.slane %v576_v54, 1 }
  0x68   : > { %1088 = vmatpush.bf16.msra.mxu3 %v3633_v62 }
  0x69   : > { %1047 = vmatpush.bf16.msra.mxu0 %v3557_v2 }
  0x6a   : > { %1061 = vmatpush.bf16.msra.mxu1 %v3621_v6 }
  0x6b   : > { %1075 = vmatpush.bf16.msra.mxu2 %v3561_v7 }
  0x6c   : > { %1089 = vmatpush.bf16.msra.mxu3 %v3625_v11  ;;  %v4686_v11 = vld [vmem:[#allocation6 + $0x274] sm:$0xf] }
  0x6d   : > { %1048 = vmatpush.bf16.msra.mxu0 %v3549_v17  ;;  %v3725_v19 = vor.u32 %v4686_v11, %v3722_v12 }
  0x6e   : > { %1062 = vmatpush.bf16.msra.mxu1 %v3613_v21  ;;  %v4684_v21 = vld [vmem:[#allocation6 + $0x264] sm:$0xf] }
  0x6f   : > { %1076 = vmatpush.bf16.msra.mxu2 %v3553_v25  ;;  %v3717_v24 = vor.u32 %v4684_v21, %v3714_v22  ;;  %v4702_v25 = vld [vmem:[#allocation6 + $0x2f4] sm:$0xf]  ;;  %v3776_v22 = vld [vmem:[#allocation6 + $0x2e0] sm:$0xf] }
  0x70   : > { %1090 = vmatpush.bf16.msra.mxu3 %v3617_v26  ;;  %v3786_v26 = vld [vmem:[#allocation6 + $0x2f8] sm:$0xf0] }
  0x71   : > { %1049 = vmatpush.bf16.msra.mxu0 %v3541_v33  ;;  %v3789_v35 = vor.u32 %v4702_v25, %v3786_v26 }
  0x72   : > { %1063 = vmatpush.bf16.msra.mxu1 %v3605_v34 }
  0x73   : > { %1077 = vmatpush.bf16.msra.mxu2 %v3545_v37  ;;  %v3709_v37 = vor.u32 %v4682_v29, %v3706_v30  ;;  %v3696_v29 = vld [vmem:[#allocation6 + $0x240] sm:$0xf]  ;;  %v4681_v30 = vld [vmem:[#allocation6 + $0x244] sm:$0xf0] }
  0x74   : > { %1091 = vmatpush.bf16.msra.mxu3 %v3609_v38  ;;  %v4700_v38 = vld [vmem:[#allocation6 + $0x2e4] sm:$0xf] }
  0x75   : > { %1050 = vmatpush.bf16.msra.mxu0 %v3533_v48 }
  0x76   : > { %1064 = vmatpush.bf16.msra.mxu1 %v3597_v49 }
  0x77   : > { %1078 = vmatpush.bf16.msra.mxu2 %v3537_v52  ;;  %v4678_v52 = vld [vmem:[#allocation6 + $0x234] sm:$0xf] }
  0x78   : > { %1092 = vmatpush.bf16.msra.mxu3 %v3601_v53  ;;  %v3690_v53 = vld [vmem:[#allocation6 + $0x238] sm:$0xf0] }
  0xb5   : > { %v531_v42 = vpop.f32.mrf.mxu0 }
  0xb6   : > { %v544_v47 = vpop.f32.mrf.mxu1 }
  0xb7   : > { %v545_v51 = vadd.f32 %v544_v47, %v531_v42  ;;  %v3781_v42 = vor.u32 %v4700_v38, %v3778_v39  ;;  %v3720_v47 = vld [vmem:[#allocation6 + $0x270] sm:$0xf]  ;;  %v3697_v38 = vor.u32 %v4681_v30, %v3696_v29  ;;  %v4691_v29 = vld [vmem:[#allocation6 + $0x294] sm:$0xf0] }
  0xb9   : > { %v574_v55 = vsub.f32 %v5150_v14, %v545_v51  ;;  %v4687_v51 = vld [vmem:[#allocation6 + $0x274] sm:$0xf0] }
  0xbb   : > { %v582_v63 = vmul.f32 %v578_v56, %v574_v55 }
  0xbd   : > { %v557_v57 = vpop.f32.mrf.mxu2  ;;  %v533_v59 = vpop.f32.mrf.mxu0 }
  0xbe   : > { %v570_v58 = vpop.f32.mrf.mxu3  ;;  %v546_v62 = vpop.f32.mrf.mxu1  ;;  %v3721_v59 = vor.u32 %v4687_v51, %v3720_v47  ;;  %v3842_v47 = vld [vmem:[#allocation6 + $0x360] sm:$0xf] }
  0xbf   : > { %v571_v60 = vadd.f32 %v570_v58, %v557_v57  ;;  %v3773_v58 = vor.u32 %v4698_v44, %v3770_v46  ;;  %v3762_v62 = vld [vmem:[#allocation6 + $0x2c8] sm:$0xf0]  ;;  %v3688_v44 = vld [vmem:[#allocation6 + $0x230] sm:$0xf]  ;;  %v4679_v46 = vld [vmem:[#allocation6 + $0x234] sm:$0xf0] }
  0xc1   : > { %v575_v0 = vsub.f32 %v5152_v15, %v571_v60  ;;  %v3693_v60 = vor.u32 %v4678_v52, %v3690_v53  ;;  %v3760_v52 = vld [vmem:[#allocation6 + $0x2c0] sm:$0xf]  ;;  %v4697_v53 = vld [vmem:[#allocation6 + $0x2c4] sm:$0xf0] }
  0xc3   : > { %v583_v1 = vmul.f32 %v579_v61, %v575_v0  ;;  %v4696_v61 = vld [vmem:[#allocation6 + $0x2c4] sm:$0xf] }
  0xc5   : > { %v584_v2 = vpack.c.bf16 %v583_v1, %v582_v63  ;;  %v559_v3 = vpop.f32.mrf.mxu2  ;;  %v3712_v63 = vld [vmem:[#allocation6 + $0x260] sm:$0xf]  ;;  %v4685_v1 = vld [vmem:[#allocation6 + $0x264] sm:$0xf0] }
  0xc6   : > { %v572_v4 = vpop.f32.mrf.mxu3  ;;  %v3682_v3 = vld [vmem:[#allocation6 + $0x228] sm:$0xf0] }
  0xc7   : > { %v586_v5 = vunpack.c.l.b16 %v584_v2  ;;  %v587_v6 = vunpack.c.h.b16 %v584_v2  ;;  %v4676_v2 = vld [vmem:[#allocation6 + $0x224] sm:$0xf]  ;;  %v3765_v4 = vor.u32 %v4696_v61, %v3762_v62  ;;  %v4677_v61 = vld [vmem:[#allocation6 + $0x224] sm:$0xf0]  ;;  %v3834_v62 = vld [vmem:[#allocation6 + $0x350] sm:$0xf] }
  0xc9   : > { %v588_v14 = vpack.c.b16 %v586_v5, %v586_v5  ;;  %v589_v7 = vpack.c.b16 %v587_v6, %v587_v6  ;;  %v3784_v5 = vld [vmem:[#allocation6 + $0x2f0] sm:$0xf]  ;;  %v4703_v6 = vld [vmem:[#allocation6 + $0x2f4] sm:$0xf0] }
  0xcb   : > { %v5171_v8 = vsel %vm590_vm0, %v5156_v45, %v588_v14  ;;  %v5174_v9 = vsel %vm590_vm0, %v5158_v50, %v589_v7  ;;  %v1100_v14 = vld [vmem:[#allocation4 + $0x4] sm:$0xf]  ;;  %v3713_v7 = vor.u32 %v4685_v1, %v3712_v63  ;;  %v4715_v63 = vld [vmem:[#allocation6 + $0x354] sm:$0xf0] }
  0xcc   : > { %799 = vmatmul.bf16.vlgmr.msrb.gmra.mxu0 %v5171_v8  ;;  %813 = vmatmul.bf16.vlgmr.msrb.gmra.mxu1 %v5174_v9 }
  0xcd   : > { %827 = vmatmul.bf16.vlgmr.msrb.gmra.mxu2 %v5171_v8  ;;  %841 = vmatmul.bf16.vlgmr.msrb.gmra.mxu3 %v5174_v9 }
  0xdc   : > { %1051 = vmatmul.bf16.vlgmr.msra.gmra.mxu0 %v5171_v8  ;;  %1065 = vmatmul.bf16.vlgmr.msra.gmra.mxu1 %v5174_v9 }
  0xdd   : > { %1079 = vmatmul.bf16.vlgmr.msra.gmra.mxu2 %v5171_v8  ;;  %1093 = vmatmul.bf16.vlgmr.msra.gmra.mxu3 %v5174_v9 }
 0x149   : > { %v800_v15 = vpop.f32.mrf.mxu0  ;;  %v814_v45 = vpop.f32.mrf.mxu1 }
 0x14a   : > { %v815_v17 = vadd.f32 %v814_v45, %v800_v15  ;;  %v3685_v15 = vor.u32 %v4676_v2, %v3682_v3  ;;  %v4694_v45 = vld [vmem:[#allocation6 + $0x2b4] sm:$0xf] }
 0x150   : > { %v828_v50 = vpop.f32.mrf.mxu2  ;;  %v842_v10 = vpop.f32.mrf.mxu3 }
 0x151   : > { %v802_v13 = vpop.f32.mrf.mxu0  ;;  %v816_v16 = vpop.f32.mrf.mxu1  ;;  %v843_v31 = vadd.f32 %v842_v10, %v828_v50  ;;  %v3754_v50 = vld [vmem:[#allocation6 + $0x2b8] sm:$0xf0]  ;;  %v3704_v10 = vld [vmem:[#allocation6 + $0x250] sm:$0xf] }
 0x152   : > { %v817_v18 = vadd.f32 %v816_v16, %v802_v13  ;;  %v4683_v13 = vld [vmem:[#allocation6 + $0x254] sm:$0xf0]  ;;  %v4674_v16 = vld [vmem:[#allocation6 + $0x214] sm:$0xf]  ;;  %v3757_v21 = vor.u32 %v4694_v45, %v3754_v50  ;;  %v3826_v50 = vld [vmem:[#allocation6 + $0x340] sm:$0xf] }
 0x153   : > { %v3705_v25 = vor.u32 %v4683_v13, %v3704_v10  ;;  %v4675_v45 = vld [vmem:[#allocation6 + $0x214] sm:$0xf0]  ;;  %v4713_v10 = vld [vmem:[#allocation6 + $0x344] sm:$0xf0] }
 0x154   : > { %v848_v20 = vpack.c.bf16 %v817_v18, %v815_v17  ;;  %v3674_v17 = vld [vmem:[#allocation6 + $0x218] sm:$0xf0] }
 0x155   : > { %v3677_v26 = vor.u32 %v4674_v16, %v3674_v17  ;;  %v3744_v16 = vld [vmem:[#allocation6 + $0x2a0] sm:$0xf]  ;;  %v4693_v17 = vld [vmem:[#allocation6 + $0x2a4] sm:$0xf0] }
 0x156   : > { %1143 = vmatpush.bf16.msrb.mxu2 %v848_v20  ;;  %v3785_v20 = vor.u32 %v4703_v6, %v3784_v5  ;;  %v4695_v5 = vld [vmem:[#allocation6 + $0x2b4] sm:$0xf0]  ;;  %v3906_v6 = vld [vmem:[#allocation6 + $0x3e0] sm:$0xf] }
 0x158   : > { %v830_v27 = vpop.f32.mrf.mxu2  ;;  %v844_v28 = vpop.f32.mrf.mxu3 }
 0x159   : > { %v845_v32 = vadd.f32 %v844_v28, %v830_v27  ;;  %v1052_v33 = vpop.f32.mrf.mxu0  ;;  %v1066_v34 = vpop.f32.mrf.mxu1  ;;  %3660 = vmatmul.msk.bf16.vlgmr.msrb.gmra.mxu2 %vm1103_vm1, %v847_v23  ;;  %v4692_v27 = vld [vmem:[#allocation6 + $0x2a4] sm:$0xf]  ;;  %v3746_v28 = vld [vmem:[#allocation6 + $0x2a8] sm:$0xf0] }
 0x15a   : > { %1383 = vmatpush.bf16.msra.mxu2 %v3725_v19  ;;  %v1067_v56 = vadd.f32 %v1066_v34, %v1052_v33  ;;  %v3850_v33 = vld [vmem:[#allocation6 + $0x370] sm:$0xf]  ;;  %v4719_v34 = vld [vmem:[#allocation6 + $0x374] sm:$0xf0] }
 0x15b   : > { %v849_v36 = vpack.c.bf16 %v845_v32, %v843_v31  ;;  %v4672_v31 = vld [vmem:[#allocation6 + $0x204] sm:$0xf]  ;;  %v3666_v32 = vld [vmem:[#allocation6 + $0x208] sm:$0xf0] }
 0x15c   : > { %v3669_v39 = vor.u32 %v4672_v31, %v3666_v32  ;;  %v3890_v31 = vld [vmem:[#allocation6 + $0x3c0] sm:$0xf]  ;;  %v4729_v32 = vld [vmem:[#allocation6 + $0x3c4] sm:$0xf0] }
 0x15d   : > { %1156 = vmatpush.bf16.msrb.mxu3 %v849_v36  ;;  %v3749_v36 = vor.u32 %v4692_v27, %v3746_v28  ;;  %v3736_v28 = vld [vmem:[#allocation6 + $0x290] sm:$0xf] }
 0x15e   : > { %1384 = vmatpush.bf16.msra.mxu2 %v3717_v24 }
 0x160   : > { %v1080_v48 = vpop.f32.mrf.mxu2  ;;  %v1094_v49 = vpop.f32.mrf.mxu3  ;;  %3661 = vmatmul.msk.bf16.vlgmr.msrb.gmra.mxu3 %vm1103_vm1, %v847_v23  ;;  %v4701_v23 = vld [vmem:[#allocation6 + $0x2e4] sm:$0xf0] }
 0x161   : > { %1397 = vmatpush.bf16.msra.mxu3 %v3789_v35  ;;  %v1054_v54 = vpop.f32.mrf.mxu0  ;;  %v1068_v55 = vpop.f32.mrf.mxu1  ;;  %v1095_v18 = vadd.f32 %v1094_v49, %v1080_v48  ;;  %v3777_v35 = vor.u32 %v4701_v23, %v3776_v22  ;;  %v4717_v48 = vld [vmem:[#allocation6 + $0x364] sm:$0xf0]  ;;  %v3818_v23 = vld [vmem:[#allocation6 + $0x330] sm:$0xf] }
 0x162   : > { %1385 = vmatpush.bf16.msra.mxu2 %v3709_v37  ;;  %v1069_v57 = vadd.f32 %v1068_v55, %v1054_v54  ;;  %v3768_v37 = vld [vmem:[#allocation6 + $0x2d0] sm:$0xf]  ;;  %v3689_v54 = vor.u32 %v4679_v46, %v3688_v44  ;;  %v4688_v55 = vld [vmem:[#allocation6 + $0x284] sm:$0xf]  ;;  %v4673_v22 = vld [vmem:[#allocation6 + $0x204] sm:$0xf0] }
 0x163   : > { %v3769_v49 = vor.u32 %v4699_v40, %v3768_v37  ;;  %v3728_v37 = vld [vmem:[#allocation6 + $0x280] sm:$0xf]  ;;  %v3882_v40 = vld [vmem:[#allocation6 + $0x3b0] sm:$0xf] }
 0x164   : > { %v1101_v0 = vpack.c.bf16 %v1069_v57, %v1067_v56  ;;  %v3730_v56 = vld [vmem:[#allocation6 + $0x288] sm:$0xf0]  ;;  %v3914_v57 = vld [vmem:[#allocation6 + $0x3f0] sm:$0xf] }
 0x165   : > { %1398 = vmatpush.bf16.msra.mxu3 %v3781_v42  ;;  %v3738_v42 = vld [vmem:[#allocation6 + $0x298] sm:$0xf0]  ;;  %v3733_v1 = vor.u32 %v4688_v55, %v3730_v56  ;;  %v3866_v55 = vld [vmem:[#allocation6 + $0x390] sm:$0xf]  ;;  %v4723_v56 = vld [vmem:[#allocation6 + $0x394] sm:$0xf0] }
 0x166   : > { %1386 = vmatpush.bf16.msra.mxu2 %v3701_v43  ;;  %1114 = vmatpush.bf16.msrb.mxu0 %v1101_v0  ;;  %v3851_v43 = vor.u32 %v4719_v34, %v3850_v33  ;;  %v3741_v51 = vor.u32 %v4690_v41, %v3738_v42  ;;  %v3761_v0 = vor.u32 %v4697_v53, %v3760_v52  ;;  %v3810_v33 = vld [vmem:[#allocation6 + $0x320] sm:$0xf]  ;;  %v4709_v34 = vld [vmem:[#allocation6 + $0x324] sm:$0xf0]  ;;  %v4727_v41 = vld [vmem:[#allocation6 + $0x3b4] sm:$0xf0] }
 0x167   : > { %v3802_v42 = vld [vmem:[#allocation6 + $0x310] sm:$0xf]  ;;  %v3883_v46 = vor.u32 %v4727_v41, %v3882_v40  ;;  %v4705_v52 = vld [vmem:[#allocation6 + $0x304] sm:$0xf0]  ;;  %v3884_v40 = vld [vmem:[#allocation6 + $0x3b8] sm:$0xf0] }
 0x168   : > { %v1082_v11 = vpop.f32.mrf.mxu2  ;;  %v1096_v12 = vpop.f32.mrf.mxu3 }
 0x169   : > { %1399 = vmatpush.bf16.msra.mxu3 %v3773_v58  ;;  %v1097_v19 = vadd.f32 %v1096_v12, %v1082_v11  ;;  %3658 = vmatmul.msk.bf16.vlgmr.msrb.gmra.mxu0 %vm1103_vm1, %v1100_v14  ;;  %v3843_v58 = vor.u32 %v4717_v48, %v3842_v47  ;;  %v3874_v48 = vld [vmem:[#allocation6 + $0x3a0] sm:$0xf] }
 0x16a   : > { %1355 = vmatpush.bf16.msra.mxu0 %v3721_v59  ;;  %1387 = vmatpush.bf16.msra.mxu2 %v3693_v60  ;;  %v4735_v59 = vld [vmem:[#allocation6 + $0x3f4] sm:$0xf0]  ;;  %v3680_v60 = vld [vmem:[#allocation6 + $0x220] sm:$0xf] }
 0x16b   : > { %v1102_v24 = vpack.c.bf16 %v1097_v19, %v1095_v18  ;;  %v3915_v2 = vor.u32 %v4735_v59, %v3914_v57  ;;  %v3681_v3 = vor.u32 %v4677_v61, %v3680_v60  ;;  %v3898_v18 = vld [vmem:[#allocation6 + $0x3d0] sm:$0xf]  ;;  %v3827_v19 = vor.u32 %v4713_v10, %v3826_v50  ;;  %v4721_v59 = vld [vmem:[#allocation6 + $0x384] sm:$0xf0]  ;;  %v3916_v50 = vld [vmem:[#allocation6 + $0x3f8] sm:$0xf0] }
 0x16c   : > { %v3867_v57 = vor.u32 %v4723_v56, %v3866_v55  ;;  %v4722_v55 = vld [vmem:[#allocation6 + $0x394] sm:$0xf]  ;;  %v3868_v56 = vld [vmem:[#allocation6 + $0x398] sm:$0xf0] }
 0x16d   : > { %1400 = vmatpush.bf16.msra.mxu3 %v3765_v4  ;;  %1127 = vmatpush.bf16.msrb.mxu1 %v1102_v24  ;;  %v3752_v4 = vld [vmem:[#allocation6 + $0x2b0] sm:$0xf]  ;;  %v4711_v24 = vld [vmem:[#allocation6 + $0x334] sm:$0xf0] }
 0x16e   : > { %1356 = vmatpush.bf16.msra.mxu0 %v3713_v7  ;;  %1388 = vmatpush.bf16.msra.mxu2 %v3685_v15  ;;  %v4733_v7 = vld [vmem:[#allocation6 + $0x3e4] sm:$0xf0]  ;;  %v3672_v15 = vld [vmem:[#allocation6 + $0x210] sm:$0xf]  ;;  %v3753_v11 = vor.u32 %v4695_v5, %v3752_v4  ;;  %v3819_v30 = vor.u32 %v4711_v24, %v3818_v23  ;;  %v4730_v23 = vld [vmem:[#allocation6 + $0x3d4] sm:$0xf] }
 0x16f   : > { %v3907_v12 = vor.u32 %v4733_v7, %v3906_v6  ;;  %v3673_v13 = vor.u32 %v4675_v45, %v3672_v15  ;;  %v4734_v45 = vld [vmem:[#allocation6 + $0x3f4] sm:$0xf]  ;;  %v3900_v24 = vld [vmem:[#allocation6 + $0x3d8] sm:$0xf0] }
 0x170   : > { %3659 = vmatmul.msk.bf16.vlgmr.msrb.gmra.mxu1 %vm1103_vm1, %v1100_v14  ;;  %v3835_v14 = vor.u32 %v4715_v63, %v3834_v62 }
 0x171   : > { %1369 = vmatpush.bf16.msra.mxu1 %v3785_v20  ;;  %1401 = vmatpush.bf16.msra.mxu3 %v3757_v21  ;;  %v4731_v20 = vld [vmem:[#allocation6 + $0x3d4] sm:$0xf0]  ;;  %v3664_v21 = vld [vmem:[#allocation6 + $0x200] sm:$0xf] }
 0x172   : > { %1357 = vmatpush.bf16.msra.mxu0 %v3705_v25  ;;  %1389 = vmatpush.bf16.msra.mxu2 %v3677_v26  ;;  %v3745_v25 = vor.u32 %v4693_v17, %v3744_v16  ;;  %v3899_v26 = vor.u32 %v4731_v20, %v3898_v18  ;;  %v3665_v27 = vor.u32 %v4673_v22, %v3664_v21  ;;  %v3908_v20 = vld [vmem:[#allocation6 + $0x3e8] sm:$0xf0]  ;;  %v1412_v21 = vld [vmem:[#allocation4 + $0x8] sm:$0xf] }
 0x173   : > { %v3919_v17 = vor.u32 %v4734_v45, %v3916_v50 }
 0x175   : > { %1370 = vmatpush.bf16.msra.mxu1 %v3777_v35  ;;  %1402 = vmatpush.bf16.msra.mxu3 %v3749_v36  ;;  %v3737_v35 = vor.u32 %v4691_v29, %v3736_v28  ;;  %v3891_v36 = vor.u32 %v4729_v32, %v3890_v31  ;;  %v3903_v29 = vor.u32 %v4730_v23, %v3900_v24  ;;  %v4728_v32 = vld [vmem:[#allocation6 + $0x3c4] sm:$0xf]  ;;  %v5200_v23 = vld [vmem:[#allocation4 + $0xc] sm:$0xf] }
 0x176   : > { %1358 = vmatpush.bf16.msra.mxu0 %v3697_v38  ;;  %1390 = vmatpush.bf16.msra.mxu2 %v3669_v39  ;;  %v4689_v38 = vld [vmem:[#allocation6 + $0x284] sm:$0xf0]  ;;  %v3811_v39 = vor.u32 %v4709_v34, %v3810_v33  ;;  %v3892_v33 = vld [vmem:[#allocation6 + $0x3c8] sm:$0xf0] }
 0x177   : > { %v3729_v44 = vor.u32 %v4689_v38, %v3728_v37  ;;  %v3844_v37 = vld [vmem:[#allocation6 + $0x368] sm:$0xf0]  ;;  %v3895_v38 = vor.u32 %v4728_v32, %v3892_v33  ;;  %v3980_v33 = vld [vmem:[#allocation6 + $0x470] sm:$0xf] }
 0x178   : > { %v3796_v32 = vld [vmem:[#allocation6 + $0x308] sm:$0xf0] }
 0x179   : > { %1371 = vmatpush.bf16.msra.mxu1 %v3769_v49  ;;  %1403 = vmatpush.bf16.msra.mxu3 %v3741_v51  ;;  %v4725_v49 = vld [vmem:[#allocation6 + $0x3a4] sm:$0xf0]  ;;  %v3794_v51 = vld [vmem:[#allocation6 + $0x300] sm:$0xf] }
 0x17a   : > { %1639 = vmatpush.bf16.msrb.mxu2 %v3851_v43  ;;  %1359 = vmatpush.bf16.msra.mxu0 %v3689_v54  ;;  %v4707_v43 = vld [vmem:[#allocation6 + $0x314] sm:$0xf0]  ;;  %v3875_v53 = vor.u32 %v4725_v49, %v3874_v48  ;;  %v3795_v54 = vor.u32 %v4705_v52, %v3794_v51  ;;  %v3876_v48 = vld [vmem:[#allocation6 + $0x3a8] sm:$0xf0]  ;;  %v4712_v52 = vld [vmem:[#allocation6 + $0x344] sm:$0xf] }
 0x17b   : > { %1391 = vmatmul.bf16.vlgmr.msra.gmra.mxu2 %v5171_v8  ;;  %v3803_v47 = vor.u32 %v4707_v43, %v3802_v42  ;;  %v4714_v42 = vld [vmem:[#allocation6 + $0x354] sm:$0xf]  ;;  %v3836_v43 = vld [vmem:[#allocation6 + $0x358] sm:$0xf0] }
 0x17c   : > { %v3839_v49 = vor.u32 %v4714_v42, %v3836_v43  ;;  %v3958_v42 = vld [vmem:[#allocation6 + $0x448] sm:$0xf0]  ;;  %v3972_v43 = vld [vmem:[#allocation6 + $0x460] sm:$0xf] }
 0x17d   : > { %1372 = vmatpush.bf16.msra.mxu1 %v3761_v0  ;;  %1404 = vmatpush.bf16.msra.mxu3 %v3733_v1 }
 0x17e   : > { %1640 = vmatpush.bf16.msrb.mxu2 %v3843_v58  ;;  %1360 = vmatpush.bf16.msra.mxu0 %v3681_v3  ;;  %v3858_v58 = vld [vmem:[#allocation6 + $0x380] sm:$0xf] }
 0x17f   : > { %v3859_v60 = vor.u32 %v4721_v59, %v3858_v58  ;;  %v4710_v58 = vld [vmem:[#allocation6 + $0x334] sm:$0xf]  ;;  %v3820_v59 = vld [vmem:[#allocation6 + $0x338] sm:$0xf0] }
 0x180   : > { %1405 = vmatmul.bf16.vlgmr.msra.gmra.mxu3 %v5174_v9 }
 0x181   : > { %1653 = vmatpush.bf16.msrb.mxu3 %v3915_v2  ;;  %1373 = vmatpush.bf16.msra.mxu1 %v3753_v11 }
 0x182   : > { %1641 = vmatpush.bf16.msrb.mxu2 %v3835_v14  ;;  %1361 = vmatpush.bf16.msra.mxu0 %v3673_v13 }
 0x185   : > { %1654 = vmatpush.bf16.msrb.mxu3 %v3907_v12  ;;  %1374 = vmatpush.bf16.msra.mxu1 %v3745_v25  ;;  %v4718_v25 = vld [vmem:[#allocation6 + $0x374] sm:$0xf] }
 0x186   : > { %1642 = vmatpush.bf16.msrb.mxu2 %v3827_v19  ;;  %1362 = vmatpush.bf16.msra.mxu0 %v3665_v27  ;;  %v4732_v19 = vld [vmem:[#allocation6 + $0x3e4] sm:$0xf] }
 0x187   : > { %v3911_v22 = vor.u32 %v4732_v19, %v3908_v20  ;;  %v4748_v19 = vld [vmem:[#allocation6 + $0x464] sm:$0xf]  ;;  %v3974_v20 = vld [vmem:[#allocation6 + $0x468] sm:$0xf0] }
 0x189   : > { %1655 = vmatpush.bf16.msrb.mxu3 %v3899_v26  ;;  %1375 = vmatpush.bf16.msra.mxu1 %v3737_v35  ;;  %v3852_v26 = vld [vmem:[#allocation6 + $0x378] sm:$0xf0] }
 0x18a   : > { %1643 = vmatpush.bf16.msrb.mxu2 %v3819_v30  ;;  %1363 = vmatmul.bf16.vlgmr.msra.gmra.mxu0 %v5171_v8  ;;  %v3855_v34 = vor.u32 %v4718_v25, %v3852_v26  ;;  %v3977_v25 = vor.u32 %v4748_v19, %v3974_v20  ;;  %v4028_v26 = vld [vmem:[#allocation6 + $0x4d0] sm:$0xf]  ;;  %v4783_v20 = vld [vmem:[#allocation6 + $0x574] sm:$0xf0] }
 0x18b   : > { %v4110_v19 = vld [vmem:[#allocation6 + $0x570] sm:$0xf] }
 0x18d   : > { %1656 = vmatpush.bf16.msrb.mxu3 %v3891_v36  ;;  %1376 = vmatpush.bf16.msra.mxu1 %v3729_v44  ;;  %v4716_v36 = vld [vmem:[#allocation6 + $0x364] sm:$0xf] }
 0x18e   : > { %1644 = vmatpush.bf16.msrb.mxu2 %v3811_v39  ;;  %v4726_v39 = vld [vmem:[#allocation6 + $0x3b4] sm:$0xf]  ;;  %v3847_v41 = vor.u32 %v4716_v36, %v3844_v37 }
 0x18f   : > { %v3887_v44 = vor.u32 %v4726_v39, %v3884_v40  ;;  %v4761_v39 = vld [vmem:[#allocation6 + $0x4c4] sm:$0xf0] }
 0x190   : > { %1377 = vmatmul.bf16.vlgmr.msra.gmra.mxu1 %v5174_v9 }
 0x191   : > { %1657 = vmatpush.bf16.msrb.mxu3 %v3883_v46 }
 0x192   : > { %1645 = vmatpush.bf16.msrb.mxu2 %v3803_v47  ;;  %v4724_v47 = vld [vmem:[#allocation6 + $0x3a4] sm:$0xf] }
 0x195   : > { %1658 = vmatpush.bf16.msrb.mxu3 %v3875_v53  ;;  %v3828_v53 = vld [vmem:[#allocation6 + $0x348] sm:$0xf0] }
 0x196   : > { %1646 = vmatpush.bf16.msrb.mxu2 %v3795_v54  ;;  %v3879_v54 = vor.u32 %v4724_v47, %v3876_v48  ;;  %v4012_v48 = vld [vmem:[#allocation6 + $0x4b0] sm:$0xf] }
 0x199   : > { %1659 = vmatpush.bf16.msrb.mxu3 %v3867_v57  ;;  %1647 = vmatmul.bf16.vlgmr.msrb.gmra.mxu2 %v5171_v8  ;;  %v3831_v57 = vor.u32 %v4712_v52, %v3828_v53  ;;  %v4742_v52 = vld [vmem:[#allocation6 + $0x434] sm:$0xf]  ;;  %v3950_v53 = vld [vmem:[#allocation6 + $0x438] sm:$0xf0] }
 0x19d   : > { %1660 = vmatpush.bf16.msrb.mxu3 %v3859_v60  ;;  %v3871_v60 = vor.u32 %v4722_v55, %v3868_v56  ;;  %v4747_v55 = vld [vmem:[#allocation6 + $0x454] sm:$0xf0] }
 0x1a0   : > { %1661 = vmatmul.bf16.vlgmr.msrb.gmra.mxu3 %v5174_v9 }
 0x1dc   : > { %v1145_v61 = vpop.f32.mrf.mxu2 }
 0x1e3   : > { %v1158_v62 = vpop.f32.mrf.mxu3 }
 0x1e4   : > { %v1147_v63 = vpop.f32.mrf.mxu2 }
 0x1e5   : > { %v4044_v63 = vld [vmem:[#allocation6 + $0x4f0] sm:$0xf] }
 0x1e6   : > { %v1116_v0 = vpop.f32.mrf.mxu0 }
 0x1e7   : > { %v5194_v1 = vadd.f32 %v1145_v61, %v1116_v0  ;;  %v4720_v61 = vld [vmem:[#allocation6 + $0x384] sm:$0xf]  ;;  %v3823_v0 = vor.u32 %v4710_v58, %v3820_v59  ;;  %v4004_v58 = vld [vmem:[#allocation6 + $0x4a0] sm:$0xf]  ;;  %v4757_v59 = vld [vmem:[#allocation6 + $0x4a4] sm:$0xf0] }
 0x1eb   : > { %v1160_v2 = vpop.f32.mrf.mxu3 }
 0x1ec   : > { %v4767_v2 = vld [vmem:[#allocation6 + $0x4f4] sm:$0xf0] }
 0x1ed   : > { %v1129_v3 = vpop.f32.mrf.mxu1 }
 0x1ee   : > { %v5196_v4 = vadd.f32 %v1158_v62, %v1129_v3  ;;  %v1118_v5 = vpop.f32.mrf.mxu0  ;;  %v3860_v62 = vld [vmem:[#allocation6 + $0x388] sm:$0xf0]  ;;  %v4750_v3 = vld [vmem:[#allocation6 + $0x474] sm:$0xf] }
 0x1ef   : > { %v3982_v5 = vld [vmem:[#allocation6 + $0x478] sm:$0xf0] }
 0x1f5   : > { %v1131_v6 = vpop.f32.mrf.mxu1 }
 0x1fe   : > { %v1392_v14 = vpop.f32.mrf.mxu2 }
 0x203   : > { %v1406_v7 = vpop.f32.mrf.mxu3 }
 0x204   : > { %v1407_v12 = vadd.f32 %v1406_v7, %v1392_v14  ;;  %v4708_v7 = vld [vmem:[#allocation6 + $0x324] sm:$0xf] }
 0x206   : > { %v1394_v15 = vpop.f32.mrf.mxu2 }
 0x207   : > { %v1364_v10 = vpop.f32.mrf.mxu0 }
 0x20b   : > { %v1408_v11 = vpop.f32.mrf.mxu3 }
 0x20c   : > { %v1409_v13 = vadd.f32 %v1408_v11, %v1394_v15  ;;  %v3812_v15 = vld [vmem:[#allocation6 + $0x328] sm:$0xf0]  ;;  %v4045_v11 = vor.u32 %v4767_v2, %v4044_v63  ;;  %v3956_v63 = vld [vmem:[#allocation6 + $0x440] sm:$0xf]  ;;  %v4005_v2 = vor.u32 %v4757_v59, %v4004_v58 }
 0x20d   : > { %v1378_v16 = vpop.f32.mrf.mxu1 }
 0x20e   : > { %v1414_v18 = vpack.c.bf16 %v1409_v13, %v1407_v12  ;;  %v1379_v30 = vadd.f32 %v1378_v16, %v1364_v10  ;;  %v3863_v10 = vor.u32 %v4720_v61, %v3860_v62  ;;  %v3985_v12 = vor.u32 %v4750_v3, %v3982_v5  ;;  %v4036_v13 = vld [vmem:[#allocation6 + $0x4e0] sm:$0xf]  ;;  %v4740_v61 = vld [vmem:[#allocation6 + $0x424] sm:$0xf]  ;;  %v3942_v62 = vld [vmem:[#allocation6 + $0x428] sm:$0xf0] }
 0x20f   : > { %v1366_v27 = vpop.f32.mrf.mxu0  ;;  %v3945_v3 = vor.u32 %v4740_v61, %v3942_v62  ;;  %v3996_v5 = vld [vmem:[#allocation6 + $0x490] sm:$0xf] }
 0x210   : > { %1438 = vmatpush.bf16.msrb.mxu1 %v1414_v18  ;;  %v4765_v18 = vld [vmem:[#allocation6 + $0x4e4] sm:$0xf0] }
 0x211   : > { %v4037_v24 = vor.u32 %v4765_v18, %v4036_v13  ;;  %v4753_v13 = vld [vmem:[#allocation6 + $0x484] sm:$0xf0]  ;;  %v3926_v18 = vld [vmem:[#allocation6 + $0x408] sm:$0xf0] }
 0x213   : > { %3791 = vmatmul.msk.bf16.vlgmr.msrb.gmra.mxu1 %vm1103_vm1, %v1412_v21 }
 0x214   : > { %1681 = vmatpush.bf16.msra.mxu1 %v3919_v17  ;;  %v3815_v17 = vor.u32 %v4708_v7, %v3812_v15  ;;  %v4738_v7 = vld [vmem:[#allocation6 + $0x414] sm:$0xf]  ;;  %v3934_v15 = vld [vmem:[#allocation6 + $0x418] sm:$0xf0] }
 0x215   : > { %v1380_v28 = vpop.f32.mrf.mxu1 }
 0x216   : > { %v1381_v31 = vadd.f32 %v1380_v28, %v1366_v27  ;;  %v4763_v28 = vld [vmem:[#allocation6 + $0x4d4] sm:$0xf0] }
 0x218   : > { %1682 = vmatpush.bf16.msra.mxu1 %v3911_v22  ;;  %v1413_v35 = vpack.c.bf16 %v1381_v31, %v1379_v30  ;;  %v3804_v22 = vld [vmem:[#allocation6 + $0x318] sm:$0xf0]  ;;  %v4704_v31 = vld [vmem:[#allocation6 + $0x304] sm:$0xf] }
 0x219   : > { %v3966_v30 = vld [vmem:[#allocation6 + $0x458] sm:$0xf0]  ;;  %v3799_v37 = vor.u32 %v4704_v31, %v3796_v32  ;;  %v4739_v31 = vld [vmem:[#allocation6 + $0x414] sm:$0xf0] }
 0x21a   : > { %1425 = vmatpush.bf16.msrb.mxu0 %v1413_v35  ;;  %v4029_v35 = vor.u32 %v4763_v28, %v4028_v26  ;;  %v4111_v26 = vor.u32 %v4783_v20, %v4110_v19  ;;  %v4102_v28 = vld [vmem:[#allocation6 + $0x560] sm:$0xf]  ;;  %v4022_v19 = vld [vmem:[#allocation6 + $0x4c8] sm:$0xf0] }
 0x21c   : > { %1683 = vmatpush.bf16.msra.mxu1 %v3903_v29  ;;  %v1648_v46 = vpop.f32.mrf.mxu2  ;;  %v4746_v29 = vld [vmem:[#allocation6 + $0x454] sm:$0xf] }
 0x21d   : > { %3790 = vmatmul.msk.bf16.vlgmr.msrb.gmra.mxu0 %vm1103_vm1, %v1412_v21  ;;  %v4706_v21 = vld [vmem:[#allocation6 + $0x314] sm:$0xf]  ;;  %v3969_v36 = vor.u32 %v4746_v29, %v3966_v30  ;;  %v4781_v29 = vld [vmem:[#allocation6 + $0x564] sm:$0xf0]  ;;  %v3932_v30 = vld [vmem:[#allocation6 + $0x410] sm:$0xf] }
 0x21e   : > { %1667 = vmatpush.bf16.msra.mxu0 %v3855_v34  ;;  %v3807_v27 = vor.u32 %v4706_v21, %v3804_v22  ;;  %v4751_v34 = vld [vmem:[#allocation6 + $0x474] sm:$0xf0]  ;;  %v3940_v21 = vld [vmem:[#allocation6 + $0x420] sm:$0xf]  ;;  %v4741_v22 = vld [vmem:[#allocation6 + $0x424] sm:$0xf0]  ;;  %v4103_v32 = vor.u32 %v4781_v29, %v4102_v28 }
 0x21f   : > { %v3981_v40 = vor.u32 %v4751_v34, %v3980_v33  ;;  %v3933_v33 = vor.u32 %v4739_v31, %v3932_v30  ;;  %v4094_v34 = vld [vmem:[#allocation6 + $0x550] sm:$0xf]  ;;  %v4754_v30 = vld [vmem:[#allocation6 + $0x494] sm:$0xf]  ;;  %v3998_v31 = vld [vmem:[#allocation6 + $0x498] sm:$0xf0] }
 0x220   : > { %1684 = vmatpush.bf16.msra.mxu1 %v3895_v38  ;;  %v4020_v38 = vld [vmem:[#allocation6 + $0x4c0] sm:$0xf] }
 0x222   : > { %1668 = vmatpush.bf16.msra.mxu0 %v3847_v41  ;;  %v4744_v41 = vld [vmem:[#allocation6 + $0x444] sm:$0xf] }
 0x223   : > { %v1662_v51 = vpop.f32.mrf.mxu3  ;;  %v3961_v47 = vor.u32 %v4744_v41, %v3958_v42  ;;  %v4777_v41 = vld [vmem:[#allocation6 + $0x544] sm:$0xf0] }
 0x224   : > { %1685 = vmatpush.bf16.msra.mxu1 %v3887_v44  ;;  %v1650_v6 = vpop.f32.mrf.mxu2  ;;  %v1663_v45 = vadd.f32 %v1662_v51, %v1648_v46  ;;  %v4749_v44 = vld [vmem:[#allocation6 + $0x464] sm:$0xf0]  ;;  %v4021_v46 = vor.u32 %v4761_v39, %v4020_v38 }
 0x225   : > { %v3973_v51 = vor.u32 %v4749_v44, %v3972_v43  ;;  %v4078_v43 = vld [vmem:[#allocation6 + $0x530] sm:$0xf]  ;;  %v4775_v44 = vld [vmem:[#allocation6 + $0x534] sm:$0xf0] }
 0x226   : > { %1669 = vmatpush.bf16.msra.mxu0 %v3839_v49  ;;  %v4759_v49 = vld [vmem:[#allocation6 + $0x4b4] sm:$0xf0] }
 0x227   : > { %v4013_v56 = vor.u32 %v4759_v49, %v4012_v48  ;;  %v4773_v48 = vld [vmem:[#allocation6 + $0x524] sm:$0xf0] }
 0x228   : > { %1686 = vmatpush.bf16.msra.mxu1 %v3879_v54  ;;  %v3964_v54 = vld [vmem:[#allocation6 + $0x450] sm:$0xf] }
 0x22a   : > { %1670 = vmatpush.bf16.msra.mxu0 %v3831_v57  ;;  %v3953_v57 = vor.u32 %v4742_v52, %v3950_v53  ;;  %v4771_v52 = vld [vmem:[#allocation6 + $0x514] sm:$0xf0] }
 0x22b   : > { %v1664_v14 = vpop.f32.mrf.mxu3 }
 0x22c   : > { %v1665_v50 = vadd.f32 %v1664_v14, %v1650_v6  ;;  %1687 = vmatpush.bf16.msra.mxu1 %v3871_v60  ;;  %v3965_v60 = vor.u32 %v4747_v55, %v3964_v54  ;;  %v4755_v6 = vld [vmem:[#allocation6 + $0x494] sm:$0xf0]  ;;  %v4054_v54 = vld [vmem:[#allocation6 + $0x500] sm:$0xf]  ;;  %v4769_v55 = vld [vmem:[#allocation6 + $0x504] sm:$0xf0] }
 0x22e   : > { %v1697_v16 = vpack.c.bf16 %v1665_v50, %v1663_v45  ;;  %1671 = vmatpush.bf16.msra.mxu0 %v3823_v0  ;;  %v4745_v0 = vld [vmem:[#allocation6 + $0x444] sm:$0xf0]  ;;  %v3948_v45 = vld [vmem:[#allocation6 + $0x430] sm:$0xf]  ;;  %v4743_v50 = vld [vmem:[#allocation6 + $0x434] sm:$0xf0] }
 0x22f   : > { %v3957_v14 = vor.u32 %v4745_v0, %v3956_v63 }
 0x230   : > { %1688 = vmatpush.bf16.msra.mxu1 %v3863_v10  ;;  %1709 = vmatpush.bf16.msra.mxu2 %v1697_v16  ;;  %v3997_v10 = vor.u32 %v4755_v6, %v3996_v5  ;;  %v3949_v16 = vor.u32 %v4743_v50, %v3948_v45  ;;  %v4766_v6 = vld [vmem:[#allocation6 + $0x4f4] sm:$0xf] }
 0x232   : > { %1672 = vmatpush.bf16.msra.mxu0 %v3815_v17  ;;  %v4736_v17 = vld [vmem:[#allocation6 + $0x404] sm:$0xf] }
 0x233   : > { %1689 = vmatmul.bf16.vlgmr.msra.gmra.mxu1 %v5174_v9  ;;  %3920 = vmatmul.msk.bf16.vlgmr.msra.gmra.mxu2 %vm1103_vm1, %v5200_v23 }
 0x234   : > { %1937 = vmatpush.bf16.msrb.mxu1 %v4045_v11  ;;  %1951 = vmatpush.bf16.msrb.mxu2 %v3985_v12  ;;  %v3937_v11 = vor.u32 %v4738_v7, %v3934_v15  ;;  %v3988_v12 = vld [vmem:[#allocation6 + $0x480] sm:$0xf] }
 0x236   : > { %1673 = vmatpush.bf16.msra.mxu0 %v3807_v27  ;;  %v3941_v27 = vor.u32 %v4741_v22, %v3940_v21  ;;  %v4758_v21 = vld [vmem:[#allocation6 + $0x4b4] sm:$0xf]  ;;  %v4014_v22 = vld [vmem:[#allocation6 + $0x4b8] sm:$0xf0] }
 0x238   : > { %1938 = vmatpush.bf16.msrb.mxu1 %v4037_v24  ;;  %1952 = vmatpush.bf16.msrb.mxu2 %v3977_v25  ;;  %v3989_v24 = vor.u32 %v4753_v13, %v3988_v12  ;;  %v3929_v25 = vor.u32 %v4736_v17, %v3926_v18  ;;  %v4038_v12 = vld [vmem:[#allocation6 + $0x4e8] sm:$0xf0]  ;;  %v4762_v13 = vld [vmem:[#allocation6 + $0x4d4] sm:$0xf]  ;;  %v4760_v18 = vld [vmem:[#allocation6 + $0x4c4] sm:$0xf] }
 0x239   : > { %v4025_v20 = vor.u32 %v4760_v18, %v4022_v19  ;;  %v4787_v18 = vld [vmem:[#allocation6 + $0x594] sm:$0xf0]  ;;  %v4770_v19 = vld [vmem:[#allocation6 + $0x514] sm:$0xf] }
 0x23a   : > { %1674 = vmatpush.bf16.msra.mxu0 %v3799_v37  ;;  %v4737_v37 = vld [vmem:[#allocation6 + $0x404] sm:$0xf0] }
 0x23c   : > { %1939 = vmatpush.bf16.msrb.mxu1 %v4029_v35  ;;  %1953 = vmatpush.bf16.msrb.mxu2 %v3969_v36  ;;  %v4779_v35 = vld [vmem:[#allocation6 + $0x554] sm:$0xf0]  ;;  %v3924_v36 = vld [vmem:[#allocation6 + $0x400] sm:$0xf] }
 0x23d   : > { %1675 = vmatmul.bf16.vlgmr.msra.gmra.mxu0 %v5171_v8  ;;  %v4095_v38 = vor.u32 %v4779_v35, %v4094_v34  ;;  %v3925_v39 = vor.u32 %v4737_v37, %v3924_v36  ;;  %v4174_v34 = vld [vmem:[#allocation6 + $0x5f0] sm:$0xf]  ;;  %v4799_v35 = vld [vmem:[#allocation6 + $0x5f4] sm:$0xf0]  ;;  %v4782_v36 = vld [vmem:[#allocation6 + $0x574] sm:$0xf] }
 0x23e   : > { %1923 = vmatpush.bf16.msrb.mxu0 %v3981_v40  ;;  %v4086_v40 = vld [vmem:[#allocation6 + $0x540] sm:$0xf]  ;;  %v4112_v37 = vld [vmem:[#allocation6 + $0x578] sm:$0xf0] }
 0x23f   : > { %v4087_v42 = vor.u32 %v4777_v41, %v4086_v40 }
 0x240   : > { %1940 = vmatpush.bf16.msrb.mxu1 %v4021_v46  ;;  %1954 = vmatpush.bf16.msrb.mxu2 %v3961_v47  ;;  %v4079_v46 = vor.u32 %v4775_v44, %v4078_v43  ;;  %v4070_v47 = vld [vmem:[#allocation6 + $0x520] sm:$0xf]  ;;  %v4175_v43 = vor.u32 %v4799_v35, %v4174_v34  ;;  %v4115_v44 = vor.u32 %v4782_v36, %v4112_v37  ;;  %v4224_v35 = vld [vmem:[#allocation6 + $0x650] sm:$0xf]  ;;  %v4811_v36 = vld [vmem:[#allocation6 + $0x654] sm:$0xf0] }
 0x241   : > { %v4071_v49 = vor.u32 %v4773_v48, %v4070_v47  ;;  %v4797_v48 = vld [vmem:[#allocation6 + $0x5e4] sm:$0xf0]  ;;  %v4225_v37 = vor.u32 %v4811_v36, %v4224_v35 }
 0x242   : > { %1924 = vmatpush.bf16.msrb.mxu0 %v3973_v51  ;;  %v4062_v51 = vld [vmem:[#allocation6 + $0x510] sm:$0xf] }
 0x243   : > { %v4063_v53 = vor.u32 %v4771_v52, %v4062_v51  ;;  %v4104_v51 = vld [vmem:[#allocation6 + $0x568] sm:$0xf0] }
 0x244   : > { %1941 = vmatpush.bf16.msrb.mxu1 %v4013_v56  ;;  %1955 = vmatpush.bf16.msrb.mxu2 %v3953_v57  ;;  %v4055_v56 = vor.u32 %v4769_v55, %v4054_v54  ;;  %v5218_v52 = vld [vmem:[#allocation4 + $0x10] sm:$0xf]  ;;  %v4158_v55 = vld [vmem:[#allocation6 + $0x5d0] sm:$0xf] }
 0x246   : > { %1925 = vmatpush.bf16.msrb.mxu0 %v3965_v60 }
 0x248   : > { %1942 = vmatpush.bf16.msrb.mxu1 %v4005_v2  ;;  %1956 = vmatpush.bf16.msrb.mxu2 %v3945_v3 }
 0x24a   : > { %1926 = vmatpush.bf16.msrb.mxu0 %v3957_v14  ;;  %v4046_v14 = vld [vmem:[#allocation6 + $0x4f8] sm:$0xf0] }
 0x24c   : > { %1943 = vmatpush.bf16.msrb.mxu1 %v3997_v10  ;;  %1957 = vmatpush.bf16.msrb.mxu2 %v3937_v11  ;;  %v4049_v10 = vor.u32 %v4766_v6, %v4046_v14  ;;  %v4764_v11 = vld [vmem:[#allocation6 + $0x4e4] sm:$0xf]  ;;  %v4142_v14 = vld [vmem:[#allocation6 + $0x5b0] sm:$0xf] }
 0x24e   : > { %1927 = vmatpush.bf16.msrb.mxu0 %v3949_v16  ;;  %v4030_v16 = vld [vmem:[#allocation6 + $0x4d8] sm:$0xf0] }
 0x24f   : > { %v4033_v17 = vor.u32 %v4762_v13, %v4030_v16 }
 0x250   : > { %1944 = vmatpush.bf16.msrb.mxu1 %v3989_v24  ;;  %1958 = vmatpush.bf16.msrb.mxu2 %v3929_v25  ;;  %v4017_v24 = vor.u32 %v4758_v21, %v4014_v22 }
 0x252   : > { %1928 = vmatpush.bf16.msrb.mxu0 %v3941_v27  ;;  %v4006_v27 = vld [vmem:[#allocation6 + $0x4a8] sm:$0xf0] }
 0x253   : > { %1945 = vmatmul.bf16.vlgmr.msrb.gmra.mxu1 %v5174_v9  ;;  %1959 = vmatmul.bf16.vlgmr.msrb.gmra.mxu2 %v5171_v8 }
 0x254   : > { %2207 = vmatpush.bf16.msra.mxu2 %v4111_v26  ;;  %v4756_v26 = vld [vmem:[#allocation6 + $0x4a4] sm:$0xf] }
 0x255   : > { %v4009_v29 = vor.u32 %v4756_v26, %v4006_v27  ;;  %v4768_v26 = vld [vmem:[#allocation6 + $0x504] sm:$0xf]  ;;  %v4056_v27 = vld [vmem:[#allocation6 + $0x508] sm:$0xf0] }
 0x256   : > { %1929 = vmatpush.bf16.msrb.mxu0 %v3933_v33  ;;  %v3990_v33 = vld [vmem:[#allocation6 + $0x488] sm:$0xf0] }
 0x258   : > { %2208 = vmatpush.bf16.msra.mxu2 %v4103_v32  ;;  %v4752_v32 = vld [vmem:[#allocation6 + $0x484] sm:$0xf] }
 0x25a   : > { %1930 = vmatpush.bf16.msrb.mxu0 %v3925_v39 }
 0x25c   : > { %2209 = vmatpush.bf16.msra.mxu2 %v4095_v38 }
 0x25d   : > { %1931 = vmatmul.bf16.vlgmr.msrb.gmra.mxu0 %v5171_v8 }
 0x260   : > { %2210 = vmatpush.bf16.msra.mxu2 %v4087_v42  ;;  %v3993_v42 = vor.u32 %v4752_v32, %v3990_v33  ;;  %v4232_v32 = vld [vmem:[#allocation6 + $0x660] sm:$0xf]  ;;  %v4813_v33 = vld [vmem:[#allocation6 + $0x664] sm:$0xf0] }
 0x261   : > { %v4233_v34 = vor.u32 %v4813_v33, %v4232_v32  ;;  %v4242_v32 = vld [vmem:[#allocation6 + $0x678] sm:$0xf0] }
 0x264   : > { %2211 = vmatpush.bf16.msra.mxu2 %v4079_v46  ;;  %v4166_v46 = vld [vmem:[#allocation6 + $0x5e0] sm:$0xf] }
 0x268   : > { %2212 = vmatpush.bf16.msra.mxu2 %v4071_v49  ;;  %v4780_v49 = vld [vmem:[#allocation6 + $0x564] sm:$0xf] }
 0x269   : > { %v4107_v54 = vor.u32 %v4780_v49, %v4104_v51  ;;  %v4803_v49 = vld [vmem:[#allocation6 + $0x614] sm:$0xf0] }
 0x26c   : > { %2213 = vmatpush.bf16.msra.mxu2 %v4063_v53  ;;  %v4167_v53 = vor.u32 %v4797_v48, %v4166_v46  ;;  %v4805_v46 = vld [vmem:[#allocation6 + $0x624] sm:$0xf0]  ;;  %v4192_v48 = vld [vmem:[#allocation6 + $0x610] sm:$0xf] }
 0x26d   : > { %v4193_v51 = vor.u32 %v4803_v49, %v4192_v48  ;;  %v4288_v49 = vld [vmem:[#allocation6 + $0x6d0] sm:$0xf] }
 0x270   : > { %2214 = vmatpush.bf16.msra.mxu2 %v4055_v56  ;;  %v4795_v56 = vld [vmem:[#allocation6 + $0x5d4] sm:$0xf0] }
 0x273   : > { %2215 = vmatmul.bf16.vlgmr.msra.gmra.mxu2 %v5171_v8 }
 0x290   : > { %v1440_v57 = vpop.f32.mrf.mxu1 }
 0x291   : > { %v5211_v58 = vadd.f32 %v1440_v57, %v5196_v4  ;;  %v4778_v57 = vld [vmem:[#allocation6 + $0x554] sm:$0xf] }
 0x298   : > { %v1442_v59 = vpop.f32.mrf.mxu1 }
 0x299   : > { %v4096_v59 = vld [vmem:[#allocation6 + $0x558] sm:$0xf0] }
 0x29a   : > { %v1427_v60 = vpop.f32.mrf.mxu0 }
 0x29b   : > { %v1444_v61 = vadd.f32 %v1427_v60, %v5194_v1  ;;  %v4041_v1 = vor.u32 %v4764_v11, %v4038_v12  ;;  %v4159_v60 = vor.u32 %v4795_v56, %v4158_v55  ;;  %v4789_v11 = vld [vmem:[#allocation6 + $0x5a4] sm:$0xf0]  ;;  %v4772_v12 = vld [vmem:[#allocation6 + $0x524] sm:$0xf] }
 0x2a2   : > { %v1429_v62 = vpop.f32.mrf.mxu0 }
 0x2a3   : > { %v4150_v62 = vld [vmem:[#allocation6 + $0x5c0] sm:$0xf] }
 0x2b0   : > { %v1690_v2 = vpop.f32.mrf.mxu1 }
 0x2b6   : > { %v1711_v63 = vpop.f32.mrf.mxu2 }
 0x2b7   : > { %v5214_v0 = vadd.f32 %v1711_v63, %v1444_v61  ;;  %v4099_v61 = vor.u32 %v4778_v57, %v4096_v59  ;;  %v4793_v63 = vld [vmem:[#allocation6 + $0x5c4] sm:$0xf0] }
 0x2b8   : > { %v1692_v7 = vpop.f32.mrf.mxu1 }
 0x2ba   : > { %v1676_v3 = vpop.f32.mrf.mxu0 }
 0x2bb   : > { %v1691_v45 = vadd.f32 %v1690_v2, %v1676_v3  ;;  %v4776_v2 = vld [vmem:[#allocation6 + $0x544] sm:$0xf]  ;;  %v4088_v3 = vld [vmem:[#allocation6 + $0x548] sm:$0xf0] }
 0x2bc   : > { %v4091_v6 = vor.u32 %v4776_v2, %v4088_v3  ;;  %v4798_v3 = vld [vmem:[#allocation6 + $0x5f4] sm:$0xf] }
 0x2be   : > { %v1713_v5 = vpop.f32.mrf.mxu2 }
 0x2bf   : > { %v4151_v5 = vor.u32 %v4793_v63, %v4150_v62 }
 0x2c2   : > { %v1678_v15 = vpop.f32.mrf.mxu0 }
 0x2c3   : > { %v1693_v50 = vadd.f32 %v1692_v7, %v1678_v15  ;;  %v4791_v7 = vld [vmem:[#allocation6 + $0x5b4] sm:$0xf0]  ;;  %v4774_v15 = vld [vmem:[#allocation6 + $0x534] sm:$0xf] }
 0x2c5   : > { %v1698_v4 = vpack.c.bf16 %v1693_v50, %v1691_v45  ;;  %v4080_v45 = vld [vmem:[#allocation6 + $0x538] sm:$0xf0]  ;;  %v4143_v50 = vor.u32 %v4791_v7, %v4142_v14 }
 0x2c7   : > { %1722 = vmatpush.bf16.msra.mxu3 %v1698_v4  ;;  %v4134_v4 = vld [vmem:[#allocation6 + $0x5a0] sm:$0xf] }
 0x2c8   : > { %v4135_v13 = vor.u32 %v4789_v11, %v4134_v4  ;;  %v4168_v4 = vld [vmem:[#allocation6 + $0x5e8] sm:$0xf0]  ;;  %v4794_v11 = vld [vmem:[#allocation6 + $0x5d4] sm:$0xf] }
 0x2ca   : > { %3921 = vmatmul.msk.bf16.vlgmr.msra.gmra.mxu3 %vm1103_vm1, %v5200_v23  ;;  %v4001_v23 = vor.u32 %v4754_v30, %v3998_v31  ;;  %v4059_v31 = vor.u32 %v4768_v26, %v4056_v27  ;;  %v4786_v26 = vld [vmem:[#allocation6 + $0x594] sm:$0xf]  ;;  %v4128_v27 = vld [vmem:[#allocation6 + $0x598] sm:$0xf0] }
 0x2cb   : > { %1965 = vmatpush.bf16.msrb.mxu3 %v4049_v10  ;;  %v4083_v10 = vor.u32 %v4774_v15, %v4080_v45 }
 0x2cf   : > { %1966 = vmatpush.bf16.msrb.mxu3 %v4041_v1  ;;  %v4072_v1 = vld [vmem:[#allocation6 + $0x528] sm:$0xf0] }
 0x2d0   : > { %v1946_v25 = vpop.f32.mrf.mxu1  ;;  %v4075_v16 = vor.u32 %v4772_v12, %v4072_v1  ;;  %v4160_v12 = vld [vmem:[#allocation6 + $0x5d8] sm:$0xf0]  ;;  %v4792_v1 = vld [vmem:[#allocation6 + $0x5c4] sm:$0xf] }
 0x2d3   : > { %1967 = vmatpush.bf16.msrb.mxu3 %v4033_v17  ;;  %v4126_v17 = vld [vmem:[#allocation6 + $0x590] sm:$0xf] }
 0x2d4   : > { %v4127_v21 = vor.u32 %v4787_v18, %v4126_v17  ;;  %v4790_v17 = vld [vmem:[#allocation6 + $0x5b4] sm:$0xf]  ;;  %v4144_v18 = vld [vmem:[#allocation6 + $0x5b8] sm:$0xf0] }
 0x2d6   : > { %v1960_v62 = vpop.f32.mrf.mxu2 }
 0x2d7   : > { %1968 = vmatpush.bf16.msrb.mxu3 %v4025_v20  ;;  %v4064_v20 = vld [vmem:[#allocation6 + $0x518] sm:$0xf0] }
 0x2d8   : > { %v1948_v38 = vpop.f32.mrf.mxu1  ;;  %v4067_v22 = vor.u32 %v4770_v19, %v4064_v20  ;;  %v4147_v19 = vor.u32 %v4790_v17, %v4144_v18 }
 0x2da   : > { %v1932_v28 = vpop.f32.mrf.mxu0 }
 0x2db   : > { %1969 = vmatpush.bf16.msrb.mxu3 %v4017_v24  ;;  %v1947_v40 = vadd.f32 %v1946_v25, %v1932_v28  ;;  %v4118_v24 = vld [vmem:[#allocation6 + $0x580] sm:$0xf]  ;;  %v4785_v25 = vld [vmem:[#allocation6 + $0x584] sm:$0xf0]  ;;  %v4240_v28 = vld [vmem:[#allocation6 + $0x670] sm:$0xf] }
 0x2dc   : > { %v4119_v30 = vor.u32 %v4785_v25, %v4118_v24 }
 0x2df   : > { %1970 = vmatpush.bf16.msrb.mxu3 %v4009_v29  ;;  %v4815_v29 = vld [vmem:[#allocation6 + $0x674] sm:$0xf0] }
 0x2e2   : > { %v1934_v39 = vpop.f32.mrf.mxu0 }
 0x2e3   : > { %v1949_v41 = vadd.f32 %v1948_v38, %v1934_v39  ;;  %1971 = vmatpush.bf16.msrb.mxu3 %v4001_v23  ;;  %v4241_v23 = vor.u32 %v4815_v29, %v4240_v28  ;;  %v4216_v38 = vld [vmem:[#allocation6 + $0x640] sm:$0xf]  ;;  %v4809_v39 = vld [vmem:[#allocation6 + $0x644] sm:$0xf0]  ;;  %v4784_v28 = vld [vmem:[#allocation6 + $0x584] sm:$0xf] }
 0x2e4   : > { %v4120_v29 = vld [vmem:[#allocation6 + $0x588] sm:$0xf0] }
 0x2e5   : > { %v1981_v47 = vpack.c.bf16 %v1949_v41, %v1947_v40  ;;  %v4217_v40 = vor.u32 %v4809_v39, %v4216_v38  ;;  %v4208_v41 = vld [vmem:[#allocation6 + $0x630] sm:$0xf] }
 0x2e7   : > { %1972 = vmatpush.bf16.msrb.mxu3 %v3993_v42  ;;  %1993 = vmatpush.bf16.msra.mxu0 %v1981_v47  ;;  %v4807_v42 = vld [vmem:[#allocation6 + $0x634] sm:$0xf0] }
 0x2ea   : > { %1973 = vmatmul.bf16.vlgmr.msrb.gmra.mxu3 %v5174_v9  ;;  %4050 = vmatmul.msk.bf16.vlgmr.msra.gmra.mxu0 %vm1103_vm1, %v5218_v52 }
 0x2eb   : > { %2221 = vmatpush.bf16.msra.mxu3 %v4175_v43  ;;  %2235 = vmatpush.bf16.msrb.mxu0 %v4115_v44  ;;  %v4209_v43 = vor.u32 %v4807_v42, %v4208_v41  ;;  %v4200_v44 = vld [vmem:[#allocation6 + $0x620] sm:$0xf]  ;;  %v4829_v42 = vld [vmem:[#allocation6 + $0x6e4] sm:$0xf0] }
 0x2ec   : > { %v4201_v47 = vor.u32 %v4805_v46, %v4200_v44  ;;  %v4234_v44 = vld [vmem:[#allocation6 + $0x668] sm:$0xf0]  ;;  %v5234_v46 = vld [vmem:[#allocation4 + $0x14] sm:$0xf] }
 0x2ef   : > { %2222 = vmatpush.bf16.msra.mxu3 %v4167_v53  ;;  %2236 = vmatpush.bf16.msrb.mxu0 %v4107_v54  ;;  %v4184_v53 = vld [vmem:[#allocation6 + $0x600] sm:$0xf]  ;;  %v4801_v54 = vld [vmem:[#allocation6 + $0x604] sm:$0xf0] }
 0x2f0   : > { %v4185_v55 = vor.u32 %v4801_v54, %v4184_v53  ;;  %v4810_v53 = vld [vmem:[#allocation6 + $0x654] sm:$0xf]  ;;  %v4226_v54 = vld [vmem:[#allocation6 + $0x658] sm:$0xf0] }
 0x2f3   : > { %2223 = vmatpush.bf16.msra.mxu3 %v4159_v60  ;;  %2237 = vmatpush.bf16.msrb.mxu0 %v4099_v61 }
 0x2f7   : > { %2224 = vmatpush.bf16.msra.mxu3 %v4151_v5  ;;  %2238 = vmatpush.bf16.msrb.mxu0 %v4091_v6  ;;  %v4176_v5 = vld [vmem:[#allocation6 + $0x5f8] sm:$0xf0]  ;;  %v1962_v6 = vpop.f32.mrf.mxu2 }
 0x2f8   : > { %v4179_v45 = vor.u32 %v4798_v3, %v4176_v5  ;;  %v4272_v5 = vld [vmem:[#allocation6 + $0x6b0] sm:$0xf] }
 0x2fb   : > { %2225 = vmatpush.bf16.msra.mxu3 %v4143_v50  ;;  %2239 = vmatpush.bf16.msrb.mxu0 %v4083_v10  ;;  %v4796_v10 = vld [vmem:[#allocation6 + $0x5e4] sm:$0xf] }
 0x2ff   : > { %2226 = vmatpush.bf16.msra.mxu3 %v4135_v13  ;;  %2240 = vmatpush.bf16.msrb.mxu0 %v4075_v16  ;;  %v4152_v13 = vld [vmem:[#allocation6 + $0x5c8] sm:$0xf0]  ;;  %v2216_v20 = vpop.f32.mrf.mxu2 }
 0x300   : > { %v4155_v16 = vor.u32 %v4792_v1, %v4152_v13  ;;  %v4819_v1 = vld [vmem:[#allocation6 + $0x694] sm:$0xf0]  ;;  %v4802_v13 = vld [vmem:[#allocation6 + $0x614] sm:$0xf] }
 0x303   : > { %2227 = vmatpush.bf16.msra.mxu3 %v4127_v21  ;;  %2241 = vmatpush.bf16.msrb.mxu0 %v4067_v22  ;;  %v4788_v21 = vld [vmem:[#allocation6 + $0x5a4] sm:$0xf]  ;;  %v4136_v22 = vld [vmem:[#allocation6 + $0x5a8] sm:$0xf0] }
 0x304   : > { %v4139_v25 = vor.u32 %v4788_v21, %v4136_v22  ;;  %v4800_v21 = vld [vmem:[#allocation6 + $0x604] sm:$0xf]  ;;  %v4186_v22 = vld [vmem:[#allocation6 + $0x608] sm:$0xf0] }
 0x307   : > { %2228 = vmatpush.bf16.msra.mxu3 %v4119_v30  ;;  %2242 = vmatpush.bf16.msrb.mxu0 %v4059_v31  ;;  %v4304_v30 = vld [vmem:[#allocation6 + $0x6f0] sm:$0xf]  ;;  %v4831_v31 = vld [vmem:[#allocation6 + $0x6f4] sm:$0xf0]  ;;  %v2218_v33 = vpop.f32.mrf.mxu2 }
 0x308   : > { %v4305_v38 = vor.u32 %v4831_v31, %v4304_v30  ;;  %v4354_v31 = vld [vmem:[#allocation6 + $0x750] sm:$0xf] }
 0x30a   : > { %2229 = vmatmul.bf16.vlgmr.msra.gmra.mxu3 %v5174_v9  ;;  %2243 = vmatmul.bf16.vlgmr.msrb.gmra.mxu0 %v5171_v8 }
 0x30b   : > { %2491 = vmatpush.bf16.msra.mxu0 %v4241_v23  ;;  %v4814_v23 = vld [vmem:[#allocation6 + $0x674] sm:$0xf] }
 0x30c   : > { %v4245_v39 = vor.u32 %v4814_v23, %v4242_v32  ;;  %v4843_v23 = vld [vmem:[#allocation6 + $0x754] sm:$0xf0] }
 0x30d   : > { %v4355_v32 = vor.u32 %v4843_v23, %v4354_v31 }
 0x30f   : > { %2492 = vmatpush.bf16.msra.mxu0 %v4233_v34 }
 0x313   : > { %2493 = vmatpush.bf16.msra.mxu0 %v4225_v37  ;;  %v4123_v37 = vor.u32 %v4784_v28, %v4120_v29  ;;  %v4362_v28 = vld [vmem:[#allocation6 + $0x760] sm:$0xf]  ;;  %v4845_v29 = vld [vmem:[#allocation6 + $0x764] sm:$0xf0] }
 0x314   : > { %v4363_v30 = vor.u32 %v4845_v29, %v4362_v28  ;;  %v4372_v28 = vld [vmem:[#allocation6 + $0x778] sm:$0xf0] }
 0x317   : > { %2494 = vmatpush.bf16.msra.mxu0 %v4217_v40  ;;  %v4296_v40 = vld [vmem:[#allocation6 + $0x6e0] sm:$0xf] }
 0x31b   : > { %2495 = vmatpush.bf16.msra.mxu0 %v4209_v43  ;;  %v4812_v43 = vld [vmem:[#allocation6 + $0x664] sm:$0xf] }
 0x31c   : > { %v4237_v48 = vor.u32 %v4812_v43, %v4234_v44  ;;  %v4835_v43 = vld [vmem:[#allocation6 + $0x714] sm:$0xf0] }
 0x31f   : > { %2496 = vmatpush.bf16.msra.mxu0 %v4201_v47  ;;  %v4297_v47 = vor.u32 %v4829_v42, %v4296_v40  ;;  %v4837_v40 = vld [vmem:[#allocation6 + $0x724] sm:$0xf0]  ;;  %v4322_v42 = vld [vmem:[#allocation6 + $0x710] sm:$0xf] }
 0x320   : > { %v4323_v44 = vor.u32 %v4835_v43, %v4322_v42  ;;  %v4418_v43 = vld [vmem:[#allocation6 + $0x7d0] sm:$0xf] }
 0x323   : > { %2497 = vmatpush.bf16.msra.mxu0 %v4193_v51  ;;  %v4827_v51 = vld [vmem:[#allocation6 + $0x6d4] sm:$0xf0] }
 0x327   : > { %2498 = vmatpush.bf16.msra.mxu0 %v4185_v55  ;;  %v4289_v55 = vor.u32 %v4827_v51, %v4288_v49 }
 0x32a   : > { %2499 = vmatmul.bf16.vlgmr.msra.gmra.mxu0 %v5171_v8 }
 0x34d   : > { %v1724_v56 = vpop.f32.mrf.mxu3 }
 0x34e   : > { %v5227_v57 = vadd.f32 %v1724_v56, %v5211_v58  ;;  %v4171_v58 = vor.u32 %v4796_v10, %v4168_v4  ;;  %v4229_v56 = vor.u32 %v4810_v53, %v4226_v54  ;;  %v4821_v10 = vld [vmem:[#allocation6 + $0x6a4] sm:$0xf0]  ;;  %v4804_v4 = vld [vmem:[#allocation6 + $0x624] sm:$0xf] }
 0x355   : > { %v1726_v59 = vpop.f32.mrf.mxu3 }
 0x356   : > { %v4280_v59 = vld [vmem:[#allocation6 + $0x6c0] sm:$0xf] }
 0x367   : > { %v1995_v60 = vpop.f32.mrf.mxu0 }
 0x368   : > { %v5230_v61 = vadd.f32 %v1995_v60, %v5214_v0  ;;  %v4163_v0 = vor.u32 %v4794_v11, %v4160_v12  ;;  %v4825_v60 = vld [vmem:[#allocation6 + $0x6c4] sm:$0xf0] }
 0x36d   : > { %v1974_v63 = vpop.f32.mrf.mxu3 }
 0x36e   : > { %v1975_v7 = vadd.f32 %v1974_v63, %v1960_v62  ;;  %v4808_v62 = vld [vmem:[#allocation6 + $0x644] sm:$0xf]  ;;  %v4218_v63 = vld [vmem:[#allocation6 + $0x648] sm:$0xf0] }
 0x36f   : > { %v1997_v2 = vpop.f32.mrf.mxu0  ;;  %v4221_v3 = vor.u32 %v4808_v62, %v4218_v63  ;;  %v4830_v62 = vld [vmem:[#allocation6 + $0x6f4] sm:$0xf]  ;;  %v4306_v63 = vld [vmem:[#allocation6 + $0x6f8] sm:$0xf0] }
 0x370   : > { %v4281_v2 = vor.u32 %v4825_v60, %v4280_v59 }
 0x375   : > { %v1976_v14 = vpop.f32.mrf.mxu3 }
 0x376   : > { %v1977_v15 = vadd.f32 %v1976_v14, %v1962_v6  ;;  %v4823_v6 = vld [vmem:[#allocation6 + $0x6b4] sm:$0xf0]  ;;  %v4806_v14 = vld [vmem:[#allocation6 + $0x634] sm:$0xf] }
 0x378   : > { %v1982_v50 = vpack.c.bf16 %v1977_v15, %v1975_v7  ;;  %v4210_v7 = vld [vmem:[#allocation6 + $0x638] sm:$0xf0]  ;;  %v4273_v15 = vor.u32 %v4823_v6, %v4272_v5 }
 0x37a   : > { %2006 = vmatpush.bf16.msra.mxu1 %v1982_v50  ;;  %v4264_v50 = vld [vmem:[#allocation6 + $0x6a0] sm:$0xf] }
 0x37b   : > { %v4265_v11 = vor.u32 %v4821_v10, %v4264_v50  ;;  %v4826_v10 = vld [vmem:[#allocation6 + $0x6d4] sm:$0xf] }
 0x37d   : > { %4051 = vmatmul.msk.bf16.vlgmr.msra.gmra.mxu1 %vm1103_vm1, %v5218_v52  ;;  %v4131_v52 = vor.u32 %v4786_v26, %v4128_v27  ;;  %v4189_v27 = vor.u32 %v4800_v21, %v4186_v22  ;;  %v4818_v21 = vld [vmem:[#allocation6 + $0x694] sm:$0xf]  ;;  %v4258_v22 = vld [vmem:[#allocation6 + $0x698] sm:$0xf0] }
 0x37e   : > { %2249 = vmatpush.bf16.msrb.mxu1 %v4179_v45  ;;  %v4213_v45 = vor.u32 %v4806_v14, %v4210_v7  ;;  %v4309_v14 = vor.u32 %v4830_v62, %v4306_v63 }
 0x382   : > { %2250 = vmatpush.bf16.msrb.mxu1 %v4171_v58  ;;  %v4202_v58 = vld [vmem:[#allocation6 + $0x628] sm:$0xf0] }
 0x383   : > { %v4205_v12 = vor.u32 %v4804_v4, %v4202_v58  ;;  %v4290_v4 = vld [vmem:[#allocation6 + $0x6d8] sm:$0xf0]  ;;  %v4824_v58 = vld [vmem:[#allocation6 + $0x6c4] sm:$0xf] }
 0x386   : > { %2251 = vmatpush.bf16.msrb.mxu1 %v4163_v0  ;;  %v4256_v0 = vld [vmem:[#allocation6 + $0x690] sm:$0xf] }
 0x387   : > { %v4257_v17 = vor.u32 %v4819_v1, %v4256_v0  ;;  %v4822_v0 = vld [vmem:[#allocation6 + $0x6b4] sm:$0xf]  ;;  %v4274_v1 = vld [vmem:[#allocation6 + $0x6b8] sm:$0xf0] }
 0x38a   : > { %2252 = vmatpush.bf16.msrb.mxu1 %v4155_v16  ;;  %v4194_v16 = vld [vmem:[#allocation6 + $0x618] sm:$0xf0] }
 0x38b   : > { %v4197_v18 = vor.u32 %v4802_v13, %v4194_v16  ;;  %v4277_v13 = vor.u32 %v4822_v0, %v4274_v1 }
 0x38d   : > { %v2230_v24 = vpop.f32.mrf.mxu3 }
 0x38e   : > { %2253 = vmatpush.bf16.msrb.mxu1 %v4147_v19  ;;  %v2231_v35 = vadd.f32 %v2230_v24, %v2216_v20  ;;  %v4248_v19 = vld [vmem:[#allocation6 + $0x680] sm:$0xf]  ;;  %v4817_v20 = vld [vmem:[#allocation6 + $0x684] sm:$0xf0]  ;;  %v4370_v24 = vld [vmem:[#allocation6 + $0x770] sm:$0xf] }
 0x38f   : > { %v4249_v26 = vor.u32 %v4817_v20, %v4248_v19 }
 0x392   : > { %2254 = vmatpush.bf16.msrb.mxu1 %v4139_v25  ;;  %v4847_v25 = vld [vmem:[#allocation6 + $0x774] sm:$0xf0] }
 0x395   : > { %v2232_v34 = vpop.f32.mrf.mxu3 }
 0x396   : > { %v2233_v36 = vadd.f32 %v2232_v34, %v2218_v33  ;;  %2255 = vmatpush.bf16.msrb.mxu1 %v4131_v52  ;;  %v4371_v52 = vor.u32 %v4847_v25, %v4370_v24  ;;  %v4346_v33 = vld [vmem:[#allocation6 + $0x740] sm:$0xf]  ;;  %v4841_v34 = vld [vmem:[#allocation6 + $0x744] sm:$0xf0]  ;;  %v4816_v24 = vld [vmem:[#allocation6 + $0x684] sm:$0xf] }
 0x397   : > { %v4250_v25 = vld [vmem:[#allocation6 + $0x688] sm:$0xf0] }
 0x398   : > { %v2265_v41 = vpack.c.bf16 %v2233_v36, %v2231_v35  ;;  %v4347_v35 = vor.u32 %v4841_v34, %v4346_v33  ;;  %v4338_v36 = vld [vmem:[#allocation6 + $0x730] sm:$0xf] }
 0x39a   : > { %2256 = vmatpush.bf16.msrb.mxu1 %v4123_v37  ;;  %2277 = vmatpush.bf16.msrb.mxu2 %v2265_v41  ;;  %v4839_v37 = vld [vmem:[#allocation6 + $0x734] sm:$0xf0] }
 0x39d   : > { %2257 = vmatmul.bf16.vlgmr.msrb.gmra.mxu1 %v5174_v9  ;;  %4180 = vmatmul.msk.bf16.vlgmr.msrb.gmra.mxu2 %vm1103_vm1, %v5234_v46 }
 0x39e   : > { %2505 = vmatpush.bf16.msra.mxu1 %v4305_v38  ;;  %2519 = vmatpush.bf16.msra.mxu2 %v4245_v39  ;;  %v4339_v38 = vor.u32 %v4839_v37, %v4338_v36  ;;  %v4330_v39 = vld [vmem:[#allocation6 + $0x720] sm:$0xf]  ;;  %v4861_v37 = vld [vmem:[#allocation6 + $0x7e4] sm:$0xf0] }
 0x39f   : > { %v4331_v41 = vor.u32 %v4837_v40, %v4330_v39  ;;  %v4364_v39 = vld [vmem:[#allocation6 + $0x768] sm:$0xf0]  ;;  %v5250_v40 = vld [vmem:[#allocation4 + $0x18] sm:$0xf] }
 0x3a2   : > { %2506 = vmatpush.bf16.msra.mxu1 %v4297_v47  ;;  %2520 = vmatpush.bf16.msra.mxu2 %v4237_v48  ;;  %v4314_v47 = vld [vmem:[#allocation6 + $0x700] sm:$0xf]  ;;  %v4833_v48 = vld [vmem:[#allocation6 + $0x704] sm:$0xf0] }
 0x3a3   : > { %v4315_v49 = vor.u32 %v4833_v48, %v4314_v47  ;;  %v4842_v47 = vld [vmem:[#allocation6 + $0x754] sm:$0xf]  ;;  %v4356_v48 = vld [vmem:[#allocation6 + $0x758] sm:$0xf0] }
 0x3a6   : > { %2507 = vmatpush.bf16.msra.mxu1 %v4289_v55  ;;  %2521 = vmatpush.bf16.msra.mxu2 %v4229_v56  ;;  %v2244_v55 = vpop.f32.mrf.mxu0 }
 0x3aa   : > { %2508 = vmatpush.bf16.msra.mxu1 %v4281_v2  ;;  %2522 = vmatpush.bf16.msra.mxu2 %v4221_v3 }
 0x3ae   : > { %2509 = vmatpush.bf16.msra.mxu1 %v4273_v15  ;;  %2523 = vmatpush.bf16.msra.mxu2 %v4213_v45  ;;  %v2246_v2 = vpop.f32.mrf.mxu0  ;;  %v4828_v15 = vld [vmem:[#allocation6 + $0x6e4] sm:$0xf]  ;;  %v4298_v45 = vld [vmem:[#allocation6 + $0x6e8] sm:$0xf0] }
 0x3b2   : > { %2510 = vmatpush.bf16.msra.mxu1 %v4265_v11  ;;  %2524 = vmatpush.bf16.msra.mxu2 %v4205_v12  ;;  %v4282_v11 = vld [vmem:[#allocation6 + $0x6c8] sm:$0xf0] }
 0x3b3   : > { %v4285_v12 = vor.u32 %v4824_v58, %v4282_v11  ;;  %v4851_v58 = vld [vmem:[#allocation6 + $0x794] sm:$0xf0]  ;;  %v4834_v11 = vld [vmem:[#allocation6 + $0x714] sm:$0xf] }
 0x3b6   : > { %2511 = vmatpush.bf16.msra.mxu1 %v4257_v17  ;;  %2525 = vmatpush.bf16.msra.mxu2 %v4197_v18  ;;  %v2500_v16 = vpop.f32.mrf.mxu0  ;;  %v4820_v17 = vld [vmem:[#allocation6 + $0x6a4] sm:$0xf]  ;;  %v4266_v18 = vld [vmem:[#allocation6 + $0x6a8] sm:$0xf0] }
 0x3b7   : > { %v4269_v20 = vor.u32 %v4820_v17, %v4266_v18  ;;  %v4832_v17 = vld [vmem:[#allocation6 + $0x704] sm:$0xf]  ;;  %v4316_v18 = vld [vmem:[#allocation6 + $0x708] sm:$0xf0] }
 0x3ba   : > { %2512 = vmatpush.bf16.msra.mxu1 %v4249_v26  ;;  %2526 = vmatpush.bf16.msra.mxu2 %v4189_v27  ;;  %v4434_v26 = vld [vmem:[#allocation6 + $0x7f0] sm:$0xf]  ;;  %v4863_v27 = vld [vmem:[#allocation6 + $0x7f4] sm:$0xf0] }
 0x3bb   : > { %v4435_v33 = vor.u32 %v4863_v27, %v4434_v26  ;;  %v4484_v27 = vld [vmem:[#allocation6 + $0x850] sm:$0xf] }
 0x3bd   : > { %2513 = vmatmul.bf16.vlgmr.msra.gmra.mxu1 %v5174_v9  ;;  %2527 = vmatmul.bf16.vlgmr.msra.gmra.mxu2 %v5171_v8 }
 0x3be   : > { %2775 = vmatpush.bf16.msrb.mxu2 %v4371_v52  ;;  %v4846_v52 = vld [vmem:[#allocation6 + $0x774] sm:$0xf]  ;;  %v2502_v29 = vpop.f32.mrf.mxu0 }
 0x3bf   : > { %v4375_v34 = vor.u32 %v4846_v52, %v4372_v28  ;;  %v4875_v52 = vld [vmem:[#allocation6 + $0x854] sm:$0xf0] }
 0x3c0   : > { %v4485_v28 = vor.u32 %v4875_v52, %v4484_v27 }
 0x3c2   : > { %2776 = vmatpush.bf16.msrb.mxu2 %v4363_v30 }
 0x3c6   : > { %2777 = vmatpush.bf16.msrb.mxu2 %v4355_v32  ;;  %v4253_v32 = vor.u32 %v4816_v24, %v4250_v25  ;;  %v4492_v24 = vld [vmem:[#allocation6 + $0x860] sm:$0xf]  ;;  %v4877_v25 = vld [vmem:[#allocation6 + $0x864] sm:$0xf0] }
 0x3c7   : > { %v4493_v26 = vor.u32 %v4877_v25, %v4492_v24  ;;  %v4502_v24 = vld [vmem:[#allocation6 + $0x878] sm:$0xf0] }
 0x3ca   : > { %2778 = vmatpush.bf16.msrb.mxu2 %v4347_v35  ;;  %v4426_v35 = vld [vmem:[#allocation6 + $0x7e0] sm:$0xf] }
 0x3ce   : > { %2779 = vmatpush.bf16.msrb.mxu2 %v4339_v38  ;;  %v4844_v38 = vld [vmem:[#allocation6 + $0x764] sm:$0xf] }
 0x3cf   : > { %v4367_v42 = vor.u32 %v4844_v38, %v4364_v39  ;;  %v4867_v38 = vld [vmem:[#allocation6 + $0x814] sm:$0xf0] }
 0x3d2   : > { %2780 = vmatpush.bf16.msrb.mxu2 %v4331_v41  ;;  %v4427_v41 = vor.u32 %v4861_v37, %v4426_v35  ;;  %v4869_v35 = vld [vmem:[#allocation6 + $0x824] sm:$0xf0]  ;;  %v4452_v37 = vld [vmem:[#allocation6 + $0x810] sm:$0xf] }
 0x3d3   : > { %v4453_v39 = vor.u32 %v4867_v38, %v4452_v37  ;;  %v4548_v38 = vld [vmem:[#allocation6 + $0x8d0] sm:$0xf] }
 0x3d6   : > { %2781 = vmatpush.bf16.msrb.mxu2 %v4323_v44  ;;  %v4859_v44 = vld [vmem:[#allocation6 + $0x7d4] sm:$0xf0] }
 0x3da   : > { %2782 = vmatpush.bf16.msrb.mxu2 %v4315_v49  ;;  %v4419_v49 = vor.u32 %v4859_v44, %v4418_v43 }
 0x3dd   : > { %2783 = vmatmul.bf16.vlgmr.msrb.gmra.mxu2 %v5171_v8 }
 0x3fa   : > { %v2008_v51 = vpop.f32.mrf.mxu1 }
 0x3fb   : > { %v5243_v53 = vadd.f32 %v2008_v51, %v5227_v57  ;;  %v4301_v57 = vor.u32 %v4828_v15, %v4298_v45  ;;  %v4359_v51 = vor.u32 %v4842_v47, %v4356_v48  ;;  %v4394_v15 = vld [vmem:[#allocation6 + $0x7a0] sm:$0xf]  ;;  %v4853_v45 = vld [vmem:[#allocation6 + $0x7a4] sm:$0xf0] }
 0x402   : > { %v2010_v54 = vpop.f32.mrf.mxu1 }
 0x403   : > { %v4410_v54 = vld [vmem:[#allocation6 + $0x7c0] sm:$0xf] }
 0x41a   : > { %v2258_v56 = vpop.f32.mrf.mxu1 }
 0x41b   : > { %v2259_v5 = vadd.f32 %v2258_v56, %v2244_v55  ;;  %v4857_v55 = vld [vmem:[#allocation6 + $0x7c4] sm:$0xf0]  ;;  %v4840_v56 = vld [vmem:[#allocation6 + $0x744] sm:$0xf] }
 0x41c   : > { %v4411_v62 = vor.u32 %v4857_v55, %v4410_v54 }
 0x420   : > { %v2279_v59 = vpop.f32.mrf.mxu2 }
 0x421   : > { %v5246_v60 = vadd.f32 %v2279_v59, %v5230_v61  ;;  %v4293_v61 = vor.u32 %v4826_v10, %v4290_v4  ;;  %v4348_v59 = vld [vmem:[#allocation6 + $0x748] sm:$0xf0]  ;;  %v4395_v10 = vor.u32 %v4853_v45, %v4394_v15  ;;  %v4858_v45 = vld [vmem:[#allocation6 + $0x7d4] sm:$0xf] }
 0x422   : > { %v2260_v3 = vpop.f32.mrf.mxu1  ;;  %v4351_v63 = vor.u32 %v4840_v56, %v4348_v59  ;;  %v4862_v59 = vld [vmem:[#allocation6 + $0x7f4] sm:$0xf]  ;;  %v4428_v15 = vld [vmem:[#allocation6 + $0x7e8] sm:$0xf0] }
 0x423   : > { %v2261_v6 = vadd.f32 %v2260_v3, %v2246_v2  ;;  %v4402_v2 = vld [vmem:[#allocation6 + $0x7b0] sm:$0xf]  ;;  %v4855_v3 = vld [vmem:[#allocation6 + $0x7b4] sm:$0xf0] }
 0x425   : > { %v2266_v7 = vpack.c.bf16 %v2261_v6, %v2259_v5  ;;  %v4838_v5 = vld [vmem:[#allocation6 + $0x734] sm:$0xf]  ;;  %v4340_v6 = vld [vmem:[#allocation6 + $0x738] sm:$0xf0] }
 0x427   : > { %2290 = vmatpush.bf16.msrb.mxu3 %v2266_v7  ;;  %v4343_v7 = vor.u32 %v4838_v5, %v4340_v6 }
 0x428   : > { %v2281_v50 = vpop.f32.mrf.mxu2 }
 0x429   : > { %v4332_v50 = vld [vmem:[#allocation6 + $0x728] sm:$0xf0] }
 0x42a   : > { %4181 = vmatmul.msk.bf16.vlgmr.msrb.gmra.mxu3 %vm1103_vm1, %v5234_v46  ;;  %v4261_v46 = vor.u32 %v4818_v21, %v4258_v22  ;;  %v4319_v22 = vor.u32 %v4832_v17, %v4316_v18  ;;  %v4850_v17 = vld [vmem:[#allocation6 + $0x794] sm:$0xf]  ;;  %v4388_v18 = vld [vmem:[#allocation6 + $0x798] sm:$0xf0] }
 0x42b   : > { %2533 = vmatpush.bf16.msra.mxu3 %v4309_v14  ;;  %v4403_v14 = vor.u32 %v4855_v3, %v4402_v2 }
 0x42f   : > { %2534 = vmatpush.bf16.msra.mxu3 %v4301_v57  ;;  %v4836_v57 = vld [vmem:[#allocation6 + $0x724] sm:$0xf] }
 0x430   : > { %v4335_v4 = vor.u32 %v4836_v57, %v4332_v50  ;;  %v4420_v57 = vld [vmem:[#allocation6 + $0x7d8] sm:$0xf0]  ;;  %v4856_v50 = vld [vmem:[#allocation6 + $0x7c4] sm:$0xf] }
 0x433   : > { %2535 = vmatpush.bf16.msra.mxu3 %v4293_v61  ;;  %v4386_v61 = vld [vmem:[#allocation6 + $0x790] sm:$0xf] }
 0x434   : > { %v4387_v0 = vor.u32 %v4851_v58, %v4386_v61  ;;  %v4854_v61 = vld [vmem:[#allocation6 + $0x7b4] sm:$0xf]  ;;  %v4404_v58 = vld [vmem:[#allocation6 + $0x7b8] sm:$0xf0] }
 0x437   : > { %2536 = vmatpush.bf16.msra.mxu3 %v4285_v12  ;;  %v4324_v12 = vld [vmem:[#allocation6 + $0x718] sm:$0xf0] }
 0x438   : > { %v4327_v1 = vor.u32 %v4834_v11, %v4324_v12  ;;  %v4407_v11 = vor.u32 %v4854_v61, %v4404_v58 }
 0x43a   : > { %v2514_v19 = vpop.f32.mrf.mxu1 }
 0x43b   : > { %2537 = vmatpush.bf16.msra.mxu3 %v4277_v13  ;;  %v2515_v31 = vadd.f32 %v2514_v19, %v2500_v16  ;;  %v4378_v13 = vld [vmem:[#allocation6 + $0x780] sm:$0xf]  ;;  %v4849_v16 = vld [vmem:[#allocation6 + $0x784] sm:$0xf0]  ;;  %v4500_v19 = vld [vmem:[#allocation6 + $0x870] sm:$0xf] }
 0x43c   : > { %v4379_v21 = vor.u32 %v4849_v16, %v4378_v13 }
 0x43f   : > { %2538 = vmatpush.bf16.msra.mxu3 %v4269_v20  ;;  %v4879_v20 = vld [vmem:[#allocation6 + $0x874] sm:$0xf0] }
 0x440   : > { %v2528_v54 = vpop.f32.mrf.mxu2 }
 0x442   : > { %v2516_v30 = vpop.f32.mrf.mxu1 }
 0x443   : > { %v2517_v23 = vadd.f32 %v2516_v30, %v2502_v29  ;;  %2539 = vmatpush.bf16.msra.mxu3 %v4261_v46  ;;  %v4501_v46 = vor.u32 %v4879_v20, %v4500_v19  ;;  %v4476_v29 = vld [vmem:[#allocation6 + $0x840] sm:$0xf]  ;;  %v4873_v30 = vld [vmem:[#allocation6 + $0x844] sm:$0xf0]  ;;  %v4848_v19 = vld [vmem:[#allocation6 + $0x784] sm:$0xf] }
 0x444   : > { %v4380_v20 = vld [vmem:[#allocation6 + $0x788] sm:$0xf0] }
 0x445   : > { %v2549_v36 = vpack.c.bf16 %v2517_v23, %v2515_v31  ;;  %v4477_v31 = vor.u32 %v4873_v30, %v4476_v29  ;;  %v4468_v23 = vld [vmem:[#allocation6 + $0x830] sm:$0xf] }
 0x447   : > { %2540 = vmatpush.bf16.msra.mxu3 %v4253_v32  ;;  %2561 = vmatpush.bf16.msrb.mxu0 %v2549_v36  ;;  %v4871_v32 = vld [vmem:[#allocation6 + $0x834] sm:$0xf0] }
 0x44a   : > { %2541 = vmatmul.bf16.vlgmr.msra.gmra.mxu3 %v5174_v9  ;;  %4310 = vmatmul.msk.bf16.vlgmr.msrb.gmra.mxu0 %vm1103_vm1, %v5250_v40 }
 0x44b   : > { %2789 = vmatpush.bf16.msrb.mxu3 %v4435_v33  ;;  %2803 = vmatpush.bf16.msra.mxu0 %v4375_v34  ;;  %v4469_v33 = vor.u32 %v4871_v32, %v4468_v23  ;;  %v4460_v34 = vld [vmem:[#allocation6 + $0x820] sm:$0xf]  ;;  %v4893_v32 = vld [vmem:[#allocation6 + $0x8e4] sm:$0xf0] }
 0x44c   : > { %v4461_v36 = vor.u32 %v4869_v35, %v4460_v34  ;;  %v4494_v34 = vld [vmem:[#allocation6 + $0x868] sm:$0xf0]  ;;  %v5266_v35 = vld [vmem:[#allocation4 + $0x1c] sm:$0xf] }
 0x44f   : > { %2790 = vmatpush.bf16.msrb.mxu3 %v4427_v41  ;;  %2804 = vmatpush.bf16.msra.mxu0 %v4367_v42  ;;  %v4444_v41 = vld [vmem:[#allocation6 + $0x800] sm:$0xf]  ;;  %v4865_v42 = vld [vmem:[#allocation6 + $0x804] sm:$0xf0] }
 0x450   : > { %v4445_v43 = vor.u32 %v4865_v42, %v4444_v41  ;;  %v4874_v41 = vld [vmem:[#allocation6 + $0x854] sm:$0xf]  ;;  %v4486_v42 = vld [vmem:[#allocation6 + $0x858] sm:$0xf0] }
 0x453   : > { %2791 = vmatpush.bf16.msrb.mxu3 %v4419_v49  ;;  %2805 = vmatpush.bf16.msra.mxu0 %v4359_v51 }
 0x457   : > { %2792 = vmatpush.bf16.msrb.mxu3 %v4411_v62  ;;  %2806 = vmatpush.bf16.msra.mxu0 %v4351_v63  ;;  %v4436_v62 = vld [vmem:[#allocation6 + $0x7f8] sm:$0xf0]  ;;  %v2530_v63 = vpop.f32.mrf.mxu2 }
 0x458   : > { %v4439_v6 = vor.u32 %v4862_v59, %v4436_v62  ;;  %v4532_v62 = vld [vmem:[#allocation6 + $0x8b0] sm:$0xf] }
 0x45b   : > { %2793 = vmatpush.bf16.msrb.mxu3 %v4403_v14  ;;  %2807 = vmatpush.bf16.msra.mxu0 %v4343_v7  ;;  %v4860_v7 = vld [vmem:[#allocation6 + $0x7e4] sm:$0xf] }
 0x45f   : > { %2794 = vmatpush.bf16.msrb.mxu3 %v4395_v10  ;;  %2808 = vmatpush.bf16.msra.mxu0 %v4335_v4  ;;  %v4412_v10 = vld [vmem:[#allocation6 + $0x7c8] sm:$0xf0] }
 0x460   : > { %v4415_v4 = vor.u32 %v4856_v50, %v4412_v10  ;;  %v2784_v12 = vpop.f32.mrf.mxu2  ;;  %v4883_v50 = vld [vmem:[#allocation6 + $0x894] sm:$0xf0]  ;;  %v4866_v10 = vld [vmem:[#allocation6 + $0x814] sm:$0xf] }
 0x463   : > { %2795 = vmatpush.bf16.msrb.mxu3 %v4387_v0  ;;  %2809 = vmatpush.bf16.msra.mxu0 %v4327_v1  ;;  %v4852_v0 = vld [vmem:[#allocation6 + $0x7a4] sm:$0xf]  ;;  %v4396_v1 = vld [vmem:[#allocation6 + $0x7a8] sm:$0xf0] }
 0x464   : > { %v4399_v16 = vor.u32 %v4852_v0, %v4396_v1  ;;  %v4864_v0 = vld [vmem:[#allocation6 + $0x804] sm:$0xf]  ;;  %v4446_v1 = vld [vmem:[#allocation6 + $0x808] sm:$0xf0] }
 0x467   : > { %2796 = vmatpush.bf16.msrb.mxu3 %v4379_v21  ;;  %2810 = vmatpush.bf16.msra.mxu0 %v4319_v22  ;;  %v4564_v21 = vld [vmem:[#allocation6 + $0x8f0] sm:$0xf]  ;;  %v4895_v22 = vld [vmem:[#allocation6 + $0x8f4] sm:$0xf0] }
 0x468   : > { %v2786_v25 = vpop.f32.mrf.mxu2  ;;  %v4565_v29 = vor.u32 %v4895_v22, %v4564_v21 }
 0x46a   : > { %2797 = vmatmul.bf16.vlgmr.msrb.gmra.mxu3 %v5174_v9  ;;  %2811 = vmatmul.bf16.vlgmr.msra.gmra.mxu0 %v5171_v8 }
 0x46b   : > { %3059 = vmatpush.bf16.msrb.mxu0 %v4501_v46  ;;  %v4878_v46 = vld [vmem:[#allocation6 + $0x874] sm:$0xf] }
 0x46c   : > { %v4505_v30 = vor.u32 %v4878_v46, %v4502_v24  ;;  %v4894_v46 = vld [vmem:[#allocation6 + $0x8f4] sm:$0xf]  ;;  %v4566_v24 = vld [vmem:[#allocation6 + $0x8f8] sm:$0xf0] }
 0x46f   : > { %3060 = vmatpush.bf16.msrb.mxu0 %v4493_v26 }
 0x473   : > { %3061 = vmatpush.bf16.msrb.mxu0 %v4485_v28  ;;  %v4383_v28 = vor.u32 %v4848_v19, %v4380_v20 }
 0x477   : > { %3062 = vmatpush.bf16.msrb.mxu0 %v4477_v31  ;;  %v4556_v31 = vld [vmem:[#allocation6 + $0x8e0] sm:$0xf] }
 0x47b   : > { %3063 = vmatpush.bf16.msrb.mxu0 %v4469_v33  ;;  %v4876_v33 = vld [vmem:[#allocation6 + $0x864] sm:$0xf] }
 0x47c   : > { %v4497_v37 = vor.u32 %v4876_v33, %v4494_v34  ;;  %v4550_v33 = vld [vmem:[#allocation6 + $0x8d8] sm:$0xf0] }
 0x47f   : > { %3064 = vmatpush.bf16.msrb.mxu0 %v4461_v36  ;;  %v4557_v36 = vor.u32 %v4893_v32, %v4556_v31  ;;  %v4558_v31 = vld [vmem:[#allocation6 + $0x8e8] sm:$0xf0]  ;;  %v5054_v32 = vmov 0  }
 0x480   : > { %4940 = vset.pattern.permute.xlu0 %v5054_v32 }
 0x483   : > { %3065 = vmatpush.bf16.msrb.mxu0 %v4453_v39  ;;  %v4891_v39 = vld [vmem:[#allocation6 + $0x8d4] sm:$0xf0] }
 0x487   : > { %3066 = vmatpush.bf16.msrb.mxu0 %v4445_v43  ;;  %v4549_v43 = vor.u32 %v4891_v39, %v4548_v38  ;;  %v4886_v39 = vld [vmem:[#allocation6 + $0x8b4] sm:$0xf] }
 0x48a   : > { %3067 = vmatmul.bf16.vlgmr.msrb.gmra.mxu0 %v5171_v8 }
 0x4ad   : > { %v2292_v44 = vpop.f32.mrf.mxu3 }
 0x4ae   : > { %v5259_v47 = vadd.f32 %v2292_v44, %v5243_v53  ;;  %v4431_v53 = vor.u32 %v4860_v7, %v4428_v15  ;;  %v4489_v44 = vor.u32 %v4874_v41, %v4486_v42  ;;  %v4885_v7 = vld [vmem:[#allocation6 + $0x8a4] sm:$0xf0]  ;;  %v4868_v15 = vld [vmem:[#allocation6 + $0x824] sm:$0xf]  ;;  %v4534_v41 = vld [vmem:[#allocation6 + $0x8b8] sm:$0xf0] }
 0x4af   : > { %v4537_v42 = vor.u32 %v4886_v39, %v4534_v41 }
 0x4b5   : > { %v2294_v48 = vpop.f32.mrf.mxu3 }
 0x4b6   : > { %v4540_v48 = vld [vmem:[#allocation6 + $0x8c0] sm:$0xf] }
 0x4c7   : > { %v2563_v49 = vpop.f32.mrf.mxu0 }
 0x4c8   : > { %v5262_v51 = vadd.f32 %v2563_v49, %v5246_v60  ;;  %v4423_v60 = vor.u32 %v4858_v45, %v4420_v57  ;;  %v4889_v49 = vld [vmem:[#allocation6 + $0x8c4] sm:$0xf0] }
 0x4cd   : > { %v2542_v55 = vpop.f32.mrf.mxu3 }
 0x4ce   : > { %v2543_v3 = vadd.f32 %v2542_v55, %v2528_v54  ;;  %v4872_v54 = vld [vmem:[#allocation6 + $0x844] sm:$0xf]  ;;  %v4478_v55 = vld [vmem:[#allocation6 + $0x848] sm:$0xf0] }
 0x4cf   : > { %v2565_v56 = vpop.f32.mrf.mxu0  ;;  %v4481_v59 = vor.u32 %v4872_v54, %v4478_v55  ;;  %v4882_v55 = vld [vmem:[#allocation6 + $0x894] sm:$0xf] }
 0x4d0   : > { %v4541_v56 = vor.u32 %v4889_v49, %v4540_v48  ;;  %v4526_v48 = vld [vmem:[#allocation6 + $0x8a8] sm:$0xf0] }
 0x4d5   : > { %v2544_v2 = vpop.f32.mrf.mxu3 }
 0x4d6   : > { %v2545_v5 = vadd.f32 %v2544_v2, %v2530_v63  ;;  %v4887_v63 = vld [vmem:[#allocation6 + $0x8b4] sm:$0xf0]  ;;  %v4870_v2 = vld [vmem:[#allocation6 + $0x834] sm:$0xf] }
 0x4d8   : > { %v2550_v14 = vpack.c.bf16 %v2545_v5, %v2543_v3  ;;  %v4470_v3 = vld [vmem:[#allocation6 + $0x838] sm:$0xf0]  ;;  %v4533_v5 = vor.u32 %v4887_v63, %v4532_v62  ;;  %v4510_v62 = vld [vmem:[#allocation6 + $0x888] sm:$0xf0] }
 0x4da   : > { %2574 = vmatpush.bf16.msrb.mxu1 %v2550_v14  ;;  %v4524_v14 = vld [vmem:[#allocation6 + $0x8a0] sm:$0xf] }
 0x4db   : > { %v4525_v45 = vor.u32 %v4885_v7, %v4524_v14  ;;  %v3116_v7 = vld [vmem:[#allocation4 + $0x20] sm:$0xf] }
 0x4dd   : > { %4311 = vmatmul.msk.bf16.vlgmr.msrb.gmra.mxu1 %vm1103_vm1, %v5250_v40  ;;  %v4391_v40 = vor.u32 %v4850_v17, %v4388_v18 }
 0x4de   : > { %2817 = vmatpush.bf16.msra.mxu1 %v4439_v6  ;;  %v4473_v6 = vor.u32 %v4870_v2, %v4470_v3 }
 0x4e2   : > { %2818 = vmatpush.bf16.msra.mxu1 %v4431_v53  ;;  %v4462_v53 = vld [vmem:[#allocation6 + $0x828] sm:$0xf0] }
 0x4e3   : > { %v4465_v57 = vor.u32 %v4868_v15, %v4462_v53 }
 0x4e6   : > { %2819 = vmatpush.bf16.msra.mxu1 %v4423_v60  ;;  %v4516_v60 = vld [vmem:[#allocation6 + $0x890] sm:$0xf] }
 0x4e7   : > { %v4517_v61 = vor.u32 %v4883_v50, %v4516_v60  ;;  %v2812_v19 = vpop.f32.mrf.mxu0 }
 0x4ea   : > { %2820 = vmatpush.bf16.msra.mxu1 %v4415_v4  ;;  %v4454_v4 = vld [vmem:[#allocation6 + $0x818] sm:$0xf0] }
 0x4eb   : > { %v4457_v58 = vor.u32 %v4866_v10, %v4454_v4 }
 0x4ed   : > { %v2798_v13 = vpop.f32.mrf.mxu3 }
 0x4ee   : > { %2821 = vmatpush.bf16.msra.mxu1 %v4407_v11  ;;  %v2799_v27 = vadd.f32 %v2798_v13, %v2784_v12  ;;  %v4508_v11 = vld [vmem:[#allocation6 + $0x880] sm:$0xf]  ;;  %v4881_v12 = vld [vmem:[#allocation6 + $0x884] sm:$0xf0] }
 0x4ef   : > { %v4509_v13 = vor.u32 %v4881_v12, %v4508_v11 }
 0x4f2   : > { %2822 = vmatpush.bf16.msra.mxu1 %v4399_v16  ;;  %v4449_v16 = vor.u32 %v4864_v0, %v4446_v1 }
 0x4f5   : > { %v2800_v26 = vpop.f32.mrf.mxu3 }
 0x4f6   : > { %v2801_v52 = vadd.f32 %v2800_v26, %v2786_v25  ;;  %2823 = vmatpush.bf16.msra.mxu1 %v4391_v40  ;;  %v2814_v25 = vpop.f32.mrf.mxu0 }
 0x4f8   : > { %v2833_v23 = vpack.c.bf16 %v2801_v52, %v2799_v27 }
 0x4fa   : > { %2824 = vmatpush.bf16.msra.mxu1 %v4383_v28  ;;  %2845 = vmatpush.bf16.msra.mxu2 %v2833_v23  ;;  %v4569_v28 = vor.u32 %v4894_v46, %v4566_v24 }
 0x4fd   : > { %2825 = vmatmul.bf16.vlgmr.msra.gmra.mxu1 %v5174_v9  ;;  %4440 = vmatmul.msk.bf16.vlgmr.msra.gmra.mxu2 %vm1103_vm1, %v5266_v35 }
 0x4fe   : > { %3073 = vmatpush.bf16.msrb.mxu1 %v4565_v29  ;;  %3087 = vmatpush.bf16.msrb.mxu2 %v4505_v30  ;;  %v4892_v30 = vld [vmem:[#allocation6 + $0x8e4] sm:$0xf] }
 0x502   : > { %3074 = vmatpush.bf16.msrb.mxu1 %v4557_v36  ;;  %3088 = vmatpush.bf16.msrb.mxu2 %v4497_v37  ;;  %v4888_v36 = vld [vmem:[#allocation6 + $0x8c4] sm:$0xf]  ;;  %v4542_v37 = vld [vmem:[#allocation6 + $0x8c8] sm:$0xf0] }
 0x503   : > { %v4545_v38 = vor.u32 %v4888_v36, %v4542_v37 }
 0x506   : > { %3075 = vmatpush.bf16.msrb.mxu1 %v4549_v43  ;;  %3089 = vmatpush.bf16.msrb.mxu2 %v4489_v44  ;;  %v4884_v44 = vld [vmem:[#allocation6 + $0x8a4] sm:$0xf] }
 0x507   : > { %v3068_v43 = vpop.f32.mrf.mxu0  ;;  %v4529_v54 = vor.u32 %v4884_v44, %v4526_v48 }
 0x50a   : > { %3076 = vmatpush.bf16.msrb.mxu1 %v4541_v56  ;;  %3090 = vmatpush.bf16.msrb.mxu2 %v4481_v59  ;;  %v4518_v56 = vld [vmem:[#allocation6 + $0x898] sm:$0xf0]  ;;  %v4880_v59 = vld [vmem:[#allocation6 + $0x884] sm:$0xf] }
 0x50e   : > { %3077 = vmatpush.bf16.msrb.mxu1 %v4533_v5  ;;  %3091 = vmatpush.bf16.msrb.mxu2 %v4473_v6  ;;  %v4513_v6 = vor.u32 %v4880_v59, %v4510_v62 }
 0x50f   : > { %v3070_v63 = vpop.f32.mrf.mxu0 }
 0x512   : > { %3078 = vmatpush.bf16.msrb.mxu1 %v4525_v45  ;;  %3092 = vmatpush.bf16.msrb.mxu2 %v4465_v57 }
 0x516   : > { %3079 = vmatpush.bf16.msrb.mxu1 %v4517_v61  ;;  %3093 = vmatpush.bf16.msrb.mxu2 %v4457_v58 }
 0x51a   : > { %3080 = vmatpush.bf16.msrb.mxu1 %v4509_v13  ;;  %3094 = vmatpush.bf16.msrb.mxu2 %v4449_v16 }
 0x51d   : > { %3081 = vmatmul.bf16.vlgmr.msrb.gmra.mxu1 %v5174_v9  ;;  %3095 = vmatmul.bf16.vlgmr.msrb.gmra.mxu2 %v5171_v8  ;;  %v3150_v8 = vld [vmem:[%s5296_s5] sm:$0xff] }
 0x51e   : > { %3153 = vperm.xlu0 %4940, %v3150_v8  }
 0x55a   : > { %v2576_v17 = vpop.f32.mrf.mxu1 }
 0x55b   : > { %v2581_v18 = vadd.f32 %v2576_v17, %v5259_v47  ;;  %v4561_v47 = vor.u32 %v4892_v30, %v4558_v31 }
 0x562   : > { %v2578_v40 = vpop.f32.mrf.mxu1 }
 0x57a   : > { %v2826_v20 = vpop.f32.mrf.mxu1 }
 0x57b   : > { %v2827_v27 = vadd.f32 %v2826_v20, %v2812_v19 }
 0x580   : > { %v2847_v21 = vpop.f32.mrf.mxu2 }
 0x581   : > { %v2864_v22 = vadd.f32 %v2847_v21, %v5262_v51  ;;  %v4890_v51 = vld [vmem:[#allocation6 + $0x8d4] sm:$0xf] }
 0x582   : > { %v2828_v26 = vpop.f32.mrf.mxu1  ;;  %v4553_v34 = vor.u32 %v4890_v51, %v4550_v33 }
 0x583   : > { %v2829_v52 = vadd.f32 %v2828_v26, %v2814_v25 }
 0x585   : > { %v2834_v29 = vpack.c.bf16 %v2829_v52, %v2827_v27 }
 0x587   : > { %2858 = vmatpush.bf16.msra.mxu3 %v2834_v29 }
 0x588   : > { %v2849_v23 = vpop.f32.mrf.mxu2 }
 0x58a   : > { %4441 = vmatmul.msk.bf16.vlgmr.msra.gmra.mxu3 %vm1103_vm1, %v5266_v35  ;;  %v4521_v35 = vor.u32 %v4882_v55, %v4518_v56 }
 0x58b   : > { %3101 = vmatpush.bf16.msrb.mxu3 %v4569_v28 }
 0x58f   : > { %3102 = vmatpush.bf16.msrb.mxu3 %v4561_v47 }
 0x590   : > { %v3154_v60 = vpop.permute.xlu0 %3153 }
 0x593   : > { %3103 = vmatpush.bf16.msrb.mxu3 %v4553_v34 }
 0x597   : > { %3104 = vmatpush.bf16.msrb.mxu3 %v4545_v38 }
 0x59a   : > { %v3082_v49 = vpop.f32.mrf.mxu1 }
 0x59b   : > { %3105 = vmatpush.bf16.msrb.mxu3 %v4537_v42  ;;  %v3083_v3 = vadd.f32 %v3082_v49, %v3068_v43 }
 0x59f   : > { %3106 = vmatpush.bf16.msrb.mxu3 %v4529_v54 }
 0x5a0   : > { %v3096_v4 = vpop.f32.mrf.mxu2 }
 0x5a2   : > { %v3084_v2 = vpop.f32.mrf.mxu1 }
 0x5a3   : > { %v3085_v5 = vadd.f32 %v3084_v2, %v3070_v63  ;;  %3107 = vmatpush.bf16.msrb.mxu3 %v4521_v35 }
 0x5a5   : > { %v3117_v14 = vpack.c.bf16 %v3085_v5, %v3083_v3 }
 0x5a7   : > { %3108 = vmatpush.bf16.msrb.mxu3 %v4513_v6  ;;  %3129 = vmatpush.bf16.msra.mxu0 %v3117_v14 }
 0x5a8   : > { %v3098_v11 = vpop.f32.mrf.mxu2 }
 0x5aa   : > { %3109 = vmatmul.bf16.vlgmr.msrb.gmra.mxu3 %v5174_v9  ;;  %4570 = vmatmul.msk.bf16.vlgmr.msra.gmra.mxu0 %vm1103_vm1, %v3116_v7 }
 0x60d   : > { %v2860_v15 = vpop.f32.mrf.mxu3 }
 0x60e   : > { %v2865_v53 = vadd.f32 %v2860_v15, %v2581_v18 }
 0x615   : > { %v2862_v45 = vpop.f32.mrf.mxu3 }
 0x627   : > { %v3131_v57 = vpop.f32.mrf.mxu0 }
 0x628   : > { %v3148_v50 = vadd.f32 %v3131_v57, %v2864_v22 }
 0x62a   : > { %v3156_v10 = vadd.f32 %v3154_v60, %v3148_v50 }
 0x62c   : > { %3158 = vst [vmem:[%s318_s10] sm:$0xff] %v3156_v10 }
 0x62d   : > { %v3110_v61 = vpop.f32.mrf.mxu3 }
 0x62e   : > { %v3111_v12 = vadd.f32 %v3110_v61, %v3096_v4 }
 0x62f   : > { %v3133_v58 = vpop.f32.mrf.mxu0 }
 0x635   : > { %v3112_v9 = vpop.f32.mrf.mxu3 }
 0x636   : > { %v3113_v0 = vadd.f32 %v3112_v9, %v3098_v11 }
 0x638   : > { %v3118_v1 = vpack.c.bf16 %v3113_v0, %v3111_v12 }
 0x63a   : > { %3142 = vmatpush.bf16.msra.mxu1 %v3118_v1 }
 0x63d   : > { %4571 = vmatmul.msk.bf16.vlgmr.msra.gmra.mxu1 %vm1103_vm1, %v3116_v7 }
 0x6ba   : > { %v3144_v13 = vpop.f32.mrf.mxu1 }
 0x6bb   : > { %v3149_v16 = vadd.f32 %v3144_v13, %v2865_v53 }
 0x6bd   : > { %v3157_v17 = vadd.f32 %v3154_v60, %v3149_v16 }
 0x6bf   : > { %3159 = vst [vmem:[%s318_s10 + $0x8] sm:$0xff] %v3157_v17 }
 0x6c2   : > { %v3146_v18 = vpop.f32.mrf.mxu1 }
 0x6c3 PF: > { %s18_s21 = sadd.s32 1, %s5045_s21  }
 0x6c4   : > { %p15_p7 = scmp.ge.s32.totalorder %s18_s21, 4  }
 0x6c6   :  { %17 = sbr.rel (!%p15_p7) target bundleno = 2 (0x2), region = 106 }
 0x6cb   :  { %3181 = vsyncpa [#allocation3], 1 }
 0x6cc   :  { %3183 = vsyncpa [#allocation3 + $0x1], 1 }
 0x6cd   :  { %3184 = vsyncpa [#allocation5], 1 }

</bundles_post_ra>
